<compile_context>
chip_gen: v7x
topology: tpu7x:2x2x1
jax: 0.10.0
libtpu: 0.0.40
codegen_flags: <defaults>
</compile_context>

<pallas_src>
import functools

import jax
import jax.numpy as jnp
from jax.experimental import pallas as pl
from jax.experimental.pallas import tpu as pltpu


def _vmem_specs(n):
    return [pl.BlockSpec(memory_space=pltpu.MemorySpace.VMEM) for _ in range(n)]


# ----------------------------------------------------------------------------
# In-kernel helpers (values, not refs)
# ----------------------------------------------------------------------------

def _ln_f32(x, g, b):
    """LayerNorm over last dim, all math in f32."""
    mu = jnp.mean(x, axis=-1, keepdims=True)
    xc = x - mu
    var = jnp.mean(xc * xc, axis=-1, keepdims=True)
    return xc * jax.lax.rsqrt(var + 1e-5) * g + b


def _mxu_matmul(a, w_bf16, b_f32):
    """act(a) @ w + b with bf16 MXU inputs and f32 accumulation.
    Weights are already stored bf16 (no per-call weight convert)."""
    acc = jnp.dot(a.astype(jnp.bfloat16), w_bf16,
                  preferred_element_type=jnp.float32)
    return acc + b_f32


# ----------------------------------------------------------------------------
# Pallas kernels
# ----------------------------------------------------------------------------

def _edge_bias_kernel(e_ref, w_ref, b_ref, o_ref):
    """edge_emb @ W_bias + b with a lane-dense (E, 128) output."""
    o_ref[...] = _mxu_matmul(e_ref[...], w_ref[...], b_ref[...]).astype(o_ref.dtype)


def pallas_edge_bias(edge_emb, w, b, num_head):
    E = edge_emb.shape[0]
    out = pl.pallas_call(
        _edge_bias_kernel,
        out_shape=jax.ShapeDtypeStruct((E, w.shape[1]), jnp.float32),
        in_specs=_vmem_specs(3),
        out_specs=pl.BlockSpec(memory_space=pltpu.MemorySpace.VMEM),
    )(edge_emb, w, b)
    return out[:, :num_head]


def _encoder_kernel(x_ref, bias_ref, win_ref, bin_ref,
                    wqkv_ref, bqkv_ref, wo_ref, bo_ref,
                    ln1g_ref, ln1b_ref, w1_ref, b1_ref, w2_ref, b2_ref,
                    ln2g_ref, ln2b_ref, o_ref, h_scr, *, num_head, scale):
    """All transformer layers in one kernel; grid axis 0 = layer index."""
    l = pl.program_id(0)

    @pl.when(l == 0)
    def _():
        # Node-input projection folded into the first grid step; hidden state
        # lives in a VMEM scratch that persists across the layer grid.
        h_scr[...] = _mxu_matmul(x_ref[...], win_ref[...], bin_ref[...])

    h = h_scr[...]                                    # (N, D) f32
    N, D = h.shape
    dh = D // num_head

    # Fused QKV projection on the MXU (bf16 in, f32 acc).
    qkv = _mxu_matmul(h, wqkv_ref[...], bqkv_ref[...])     # (N, 3D) f32
    wo = wo_ref[...]                                        # (D, D) bf16

    # Per-head attention with Wo folded into the accumulation: every head adds
    # into the same lane-dense (N, D) accumulator; no concat / relayout.
    acc = jnp.zeros((N, D), jnp.float32)
    for hd in range(num_head):
        qh = qkv[:, hd * dh:(hd + 1) * dh].astype(jnp.bfloat16)
        kh = qkv[:, D + hd * dh:D + (hd + 1) * dh].astype(jnp.bfloat16)
        vh = qkv[:, 2 * D + hd * dh:2 * D + (hd + 1) * dh].astype(jnp.bfloat16)
        # q @ k^T without materializing a transpose: contract last dims.
        s = jax.lax.dot_general(qh, kh, (((1,), (1,)), ((), ())),
                                preferred_element_type=jnp.float32)
        s = s * scale + bias_ref[hd]                        # (N, N) f32
        s = s - jnp.max(s, axis=-1, keepdims=True)
        p = jnp.exp(s)
        p = p * pl.reciprocal(jnp.sum(p, axis=-1, keepdims=True), approx=True)
        ctx = jnp.dot(p.astype(jnp.bfloat16), vh,
                      preferred_element_type=jnp.float32)   # (N, dh)
        acc = acc + jnp.dot(ctx.astype(jnp.bfloat16),
                            wo[hd * dh:(hd + 1) * dh, :],
                            preferred_element_type=jnp.float32)
    attn = acc + bo_ref[...]

    # Residual + LN1, FFN (relu) + residual + LN2 (f32 VPU math).
    h1 = _ln_f32(h + attn, ln1g_ref[...], ln1b_ref[...])
    f = jnp.maximum(_mxu_matmul(h1, w1_ref[...], b1_ref[...]), 0.0)
    f = _mxu_matmul(f, w2_ref[...], b2_ref[...])
    h2 = _ln_f32(h1 + f, ln2g_ref[...], ln2b_ref[...])

    h_scr[...] = h2

    @pl.when(l == pl.num_programs(0) - 1)
    def _():
        o_ref[...] = h2.astype(o_ref.dtype)


def pallas_transformer_encoder(x, bias, ep, num_head):
    """One pallas_call for all layers; bias/x resident, per-layer weights gridded."""
    N, D = x.shape
    H = num_head
    L = ep["wqkv"].shape[0]
    F = ep["w1"].shape[2]
    dh = D // H
    scale = 1.0 / float(dh) ** 0.5

    res2 = lambda l: (0, 0)        # resident 2-D block (same block every step)
    res3 = lambda l: (0, 0, 0)     # resident 3-D block
    lay3 = lambda l: (l, 0, 0)     # per-layer stacked weights

    in_specs = [
        pl.BlockSpec((N, D), res2),                 # x (raw node embeddings)
        pl.BlockSpec((H, N, N), res3),              # attention bias (resident)
        pl.BlockSpec((D, D), res2),                 # node_in W
        pl.BlockSpec((1, D), res2),                 # node_in b
        pl.BlockSpec((None, D, 3 * D), lay3),       # wqkv
        pl.BlockSpec((None, 1, 3 * D), lay3),       # bqkv
        pl.BlockSpec((None, D, D), lay3),           # wo
        pl.BlockSpec((None, 1, D), lay3),           # bo
        pl.BlockSpec((None, 1, D), lay3),           # ln1_g
        pl.BlockSpec((None, 1, D), lay3),           # ln1_b
        pl.BlockSpec((None, D, F), lay3),           # w1
        pl.BlockSpec((None, 1, F), lay3),           # b1
        pl.BlockSpec((None, F, D), lay3),           # w2
        pl.BlockSpec((None, 1, D), lay3),           # b2
        pl.BlockSpec((None, 1, D), lay3),           # ln2_g
        pl.BlockSpec((None, 1, D), lay3),           # ln2_b
    ]

    return pl.pallas_call(
        functools.partial(_encoder_kernel, num_head=H, scale=scale),
        out_shape=jax.ShapeDtypeStruct((N, D), x.dtype),
        grid_spec=pltpu.PrefetchScalarGridSpec(
            num_scalar_prefetch=0, grid=(L,),
            in_specs=in_specs,
            out_specs=pl.BlockSpec((N, D), res2),
            scratch_shapes=[pltpu.VMEM((N, D), jnp.float32)]),
        compiler_params=pltpu.CompilerParams(
            dimension_semantics=("arbitrary",),
            vmem_limit_bytes=32 * 1024 * 1024),
    )(x, bias, ep["win"], ep["bin"], ep["wqkv"], ep["bqkv"], ep["wo"], ep["bo"],
      ep["ln1_g"], ep["ln1_b"], ep["w1"], ep["b1"], ep["w2"], ep["b2"],
      ep["ln2_g"], ep["ln2_b"])


def _mech_kernel(*refs, num_hidden):
    """feat -> [Linear+ReLU]*num_hidden -> Linear(128-padded); one grid step = one
    mechanics group (bond / angle / torsion)."""
    feat_ref = refs[0]
    o_ref = refs[-1]
    h = feat_ref[...].astype(jnp.float32)
    idx = 1
    for _ in range(num_hidden):
        h = jnp.maximum(_mxu_matmul(h, refs[idx][...], refs[idx + 1][...]), 0.0)
        idx += 2
    o_ref[...] = _mxu_matmul(h, refs[idx][...], refs[idx + 1][...]).astype(o_ref.dtype)


def pallas_mech_mlps(mech, feats):
    """All three mechanics MLPs fused into one pallas_call (grid over groups)."""
    G, Mmax, Fmax = feats.shape
    num_hidden = len(mech["hidden"])
    lay3 = lambda g: (g, 0, 0)

    in_specs = [pl.BlockSpec((None, Mmax, Fmax), lay3)]
    args = [feats]
    for w, b in mech["hidden"]:
        in_specs += [pl.BlockSpec((None,) + w.shape[1:], lay3),
                     pl.BlockSpec((None,) + b.shape[1:], lay3)]
        args += [w, b]
    in_specs += [pl.BlockSpec((None,) + mech["out_w"].shape[1:], lay3),
                 pl.BlockSpec((None,) + mech["out_b"].shape[1:], lay3)]
    args += [mech["out_w"], mech["out_b"]]

    return pl.pallas_call(
        functools.partial(_mech_kernel, num_hidden=num_hidden),
        out_shape=jax.ShapeDtypeStruct((G, Mmax, 128), jnp.float32),
        grid_spec=pltpu.PrefetchScalarGridSpec(
            num_scalar_prefetch=0, grid=(G,),
            in_specs=in_specs,
            out_specs=pl.BlockSpec((None, Mmax, 128), lay3)),
        compiler_params=pltpu.CompilerParams(
            dimension_semantics=("parallel",),
            vmem_limit_bytes=32 * 1024 * 1024),
    )(*args)


# ----------------------------------------------------------------------------
# Model (parameters + forward), built on the Pallas kernels above
# ----------------------------------------------------------------------------

def init_params(key, *, dim_embed, num_layer, num_head, num_layer_mlp,
                dim_ffn=None, num_bond_types=8, num_angle_types=8,
                num_torsion_types=8):
    D = dim_embed
    F = 2 * D if dim_ffn is None else dim_ffn
    keys = iter(jax.random.split(key, 512))
    nk = lambda: next(keys)

    # Weights stored bf16 (perf feedback: only cast activations in-kernel),
    # biases / LN params stay f32.
    def dense(din, dout):
        w = (jax.random.normal(nk(), (din, dout), jnp.float32)
             / jnp.sqrt(float(din))).astype(jnp.bfloat16)
        return w, jnp.zeros((1, dout), jnp.float32)

    def dense_stack(n, din, dout):
        ws, bs = zip(*[dense(din, dout) for _ in range(n)])
        return jnp.stack(ws), jnp.stack(bs)

    params = {
        "atom_embed": 0.1 * jax.random.normal(nk(), (4, D), jnp.float32),
        "edge_embed": 0.1 * jax.random.normal(nk(), (20, D), jnp.float32),
    }

    # Edge-bias projection, output lane-padded to 128 (first num_head cols real).
    ebw, ebb = dense(D, num_head)
    params["edge_bias_w"] = jnp.pad(ebw, ((0, 0), (0, 128 - num_head)))
    params["edge_bias_b"] = jnp.pad(ebb, ((0, 0), (0, 128 - num_head)))

    enc = {}
    enc["win"], enc["bin"] = dense(D, D)
    enc["wqkv"], enc["bqkv"] = dense_stack(num_layer, D, 3 * D)
    enc["wo"], enc["bo"] = dense_stack(num_layer, D, D)
    enc["w1"], enc["b1"] = dense_stack(num_layer, D, F)
    enc["w2"], enc["b2"] = dense_stack(num_layer, F, D)
    enc["ln1_g"] = jnp.ones((num_layer, 1, D), jnp.float32)
    enc["ln1_b"] = jnp.zeros((num_layer, 1, D), jnp.float32)
    enc["ln2_g"] = jnp.ones((num_layer, 1, D), jnp.float32)
    enc["ln2_b"] = jnp.zeros((num_layer, 1, D), jnp.float32)
    params["enc"] = enc

    # Mechanics MLPs (bond / angle / torsion) stacked into one parameter set:
    # features padded to Fmax = 5*D, output head padded to 128 lanes.
    Fmax = 5 * D
    n_atoms = (2, 3, 4)
    n_types = (num_bond_types, num_angle_types, num_torsion_types)
    mech = {"type_embed": [0.1 * jax.random.normal(nk(), (t, D), jnp.float32)
                           for t in n_types]}
    hidden = []
    w0s, b0s = [], []
    for n in n_atoms:
        w, b = dense((n + 1) * D, D)
        w0s.append(jnp.pad(w, ((0, Fmax - (n + 1) * D), (0, 0))))
        b0s.append(b)
    hidden.append((jnp.stack(w0s), jnp.stack(b0s)))
    for _ in range(num_layer_mlp - 1):
        hidden.append(dense_stack(3, D, D))
    mech["hidden"] = hidden
    wouts, bouts = [], []
    for _ in range(3):
        w, b = dense(D, 1)
        wouts.append(jnp.pad(w, ((0, 0), (0, 127))))
        bouts.append(jnp.pad(b, ((0, 0), (0, 127))))
    mech["out_w"] = jnp.stack(wouts)
    mech["out_b"] = jnp.stack(bouts)
    params["mech"] = mech
    return params


def _unit(v):
    return v / (jnp.linalg.norm(v, axis=-1, keepdims=True) + 1e-8)


def _mechanics_scores(mech, node_emb, bonds, bond_types, angles, angle_types,
                      torsions, torsion_types):
    """Build per-group features (JAX gathers), run the single fused MLP kernel."""
    D = node_emb.shape[1]
    Fmax = 5 * D
    te = mech["type_embed"]
    fb = jnp.concatenate([node_emb[bonds[:, 0]], node_emb[bonds[:, 1]],
                          te[0][bond_types]], axis=-1)
    fa = jnp.concatenate([node_emb[angles[:, 0]], node_emb[angles[:, 1]],
                          node_emb[angles[:, 2]], te[1][angle_types]], axis=-1)
    ft = jnp.concatenate([node_emb[torsions[:, 0]], node_emb[torsions[:, 1]],
                          node_emb[torsions[:, 2]], node_emb[torsions[:, 3]],
                          te[2][torsion_types]], axis=-1)
    counts = (fb.shape[0], fa.shape[0], ft.shape[0])
    Mmax = max(counts)

    def pad(f):
        return jnp.pad(f, ((0, Mmax - f.shape[0]), (0, Fmax - f.shape[1])))

    feats = jnp.stack([pad(fb), pad(fa), pad(ft)], axis=0)   # (3, Mmax, Fmax)
    out = pallas_mech_mlps(mech, feats)                      # (3, Mmax, 128)
    return (out[0, :counts[0], 0:1],
            out[1, :counts[1], 0:1],
            out[2, :counts[2], 0:1])


def mechanics_forward(params, cfg, pos, atoms, aa_embedding, edge_index, edge_type,
                      bonds, bond_types, angles, angle_types, torsions, torsion_types):
    D = cfg["dim_embed"]
    H = cfg["num_head"]
    n_res = aa_embedding.shape[0]
    atoms = atoms.reshape(n_res, 4)
    pos = pos.reshape(n_res * 4, -1)

    node_emb = (params["atom_embed"][atoms]
                + aa_embedding[:, None, :]).reshape(n_res * 4, D)
    edge_emb = params["edge_embed"][edge_type]
    N = node_emb.shape[0]

    # Per-edge, per-head additive attention bias; non-edges masked (bi=True).
    eb = pallas_edge_bias(edge_emb, params["edge_bias_w"], params["edge_bias_b"], H)
    src, dst = edge_index[0], edge_index[1]
    # TODO(synk): dense (H,N,N) bias + scatter stays in JAX; for realistic N keep
    # it sparse and build per-tile inside a KV-tiled attention kernel.
    bias = jnp.full((H, N, N), -1e9, dtype=jnp.float32)
    diag = jnp.arange(N)
    bias = bias.at[:, diag, diag].set(0.0)
    bias = bias.at[:, src, dst].set(eb.T)
    bias = bias.at[:, dst, src].set(eb.T)

    # Whole encoder (node_in projection + all layers) in one pallas_call.
    node_emb = pallas_transformer_encoder(node_emb, bias, params["enc"], H)

    # All three mechanics MLPs in one pallas_call.
    s_bond, s_angle, s_tor = _mechanics_scores(
        params["mech"], node_emb, bonds, bond_types, angles, angle_types,
        torsions, torsion_types)

    pos_update = pos  # matches reference: pos_update = pos.clone()

    # TODO(synk): scatter-add of position deltas kept in JAX (no clean TPU Pallas scatter).
    i, j = bonds[:, 0], bonds[:, 1]
    d = _unit(pos[j] - pos[i])
    pos_update = pos_update.at[i].add(s_bond * d)
    pos_update = pos_update.at[j].add(-s_bond * d)

    i, j, k = angles[:, 0], angles[:, 1], angles[:, 2]
    u = _unit(pos[i] - pos[j])
    v = _unit(pos[k] - pos[j])
    cos = jnp.sum(u * v, axis=-1, keepdims=True)
    di = _unit(v - cos * u)
    dk = _unit(u - cos * v)
    pos_update = pos_update.at[i].add(s_angle * di)
    pos_update = pos_update.at[k].add(s_angle * dk)

    i, j, k, l = torsions[:, 0], torsions[:, 1], torsions[:, 2], torsions[:, 3]
    b1, b2, b3 = pos[j] - pos[i], pos[k] - pos[j], pos[l] - pos[k]
    n1 = _unit(jnp.cross(b1, b2))
    n2 = _unit(jnp.cross(b2, b3))
    pos_update = pos_update.at[i].add(s_tor * n1)
    pos_update = pos_update.at[l].add(-s_tor * n2)
    return pos_update


# ----------------------------------------------------------------------------
# Demo
# ----------------------------------------------------------------------------

if __name__ == "__main__":
    key = jax.random.PRNGKey(0)
    ks = jax.random.split(key, 16)

    D, n_res, H, num_layer, num_layer_mlp = 32, 8, 4, 2, 2
    N = n_res * 4

    cfg = {"dim_embed": D, "num_head": H}
    params = init_params(ks[0], dim_embed=D, num_layer=num_layer,
                         num_head=H, num_layer_mlp=num_layer_mlp)

    pos = jax.random.normal(ks[1], (N, 3), jnp.float32)
    atoms = jax.random.randint(ks[2], (N,), 0, 4)
    aa_embedding = jax.random.normal(ks[3], (n_res, D), jnp.float32)

    E = 64
    edge_index = jax.random.randint(ks[4], (2, E), 0, N)
    edge_type = jax.random.randint(ks[5], (E,), 0, 20)

    bonds = jax.random.randint(ks[6], (24, 2), 0, N)
    bond_types = jax.random.randint(ks[7], (24,), 0, 8)
    angles = jax.random.randint(ks[8], (16, 3), 0, N)
    angle_types = jax.random.randint(ks[9], (16,), 0, 8)
    torsions = jax.random.randint(ks[10], (12, 4), 0, N)
    torsion_types = jax.random.randint(ks[11], (12,), 0, 8)

    fwd = jax.jit(lambda p, *args: mechanics_forward(p, cfg, *args))
    out = fwd(params, pos, atoms, aa_embedding, edge_index, edge_type,
              bonds, bond_types, angles, angle_types, torsions, torsion_types)
    jax.block_until_ready(out)
    assert out.shape == (N, 3) and out.dtype == jnp.float32
    print("KERNEL_OK")
</pallas_src>

<mosaic_0001>
module attributes {stable_mosaic.version = 11 : i64} {
  func.func @_edge_bias_kernel(%arg0: memref<64x32xf32, #tpu.memory_space<vmem>>, %arg1: memref<32x128xbf16, #tpu.memory_space<vmem>>, %arg2: memref<1x128xf32, #tpu.memory_space<vmem>>, %arg3: memref<64x128xf32, #tpu.memory_space<vmem>>) attributes {dimension_semantics = [], scalar_prefetch = 0 : i64, scratch_operands = 0 : i64, tpu.core_type = #tpu.core_type<tc>} {
    %c0 = arith.constant 0 : index
    %c0_0 = arith.constant 0 : index
    %0 = vector.load %arg0[%c0, %c0_0] : memref<64x32xf32, #tpu.memory_space<vmem>>, vector<64x32xf32>
    %c0_1 = arith.constant 0 : index
    %c0_2 = arith.constant 0 : index
    %1 = vector.load %arg1[%c0_1, %c0_2] : memref<32x128xbf16, #tpu.memory_space<vmem>>, vector<32x128xbf16>
    %c0_3 = arith.constant 0 : index
    %c0_4 = arith.constant 0 : index
    %2 = vector.load %arg2[%c0_3, %c0_4] : memref<1x128xf32, #tpu.memory_space<vmem>>, vector<1x128xf32>
    %3 = arith.truncf %0 : vector<64x32xf32> to vector<64x32xbf16>
    %cst = arith.constant dense<0.000000e+00> : vector<64x128xf32>
    %4 = tpu.matmul %3, %1, %cst {dimension_numbers = #tpu.dot_dimension_numbers<[1], [0], [0], [1], [0, 0, 1, 1], [], []>} : vector<64x32xbf16>, vector<32x128xbf16>, vector<64x128xf32> -> vector<64x128xf32>
    %5 = vector.broadcast %2 : vector<1x128xf32> to vector<64x128xf32>
    %6 = arith.addf %4, %5 : vector<64x128xf32>
    %c0_5 = arith.constant 0 : index
    %c0_6 = arith.constant 0 : index
    %7 = vector.load %arg3[%c0_5, %c0_6] : memref<64x128xf32, #tpu.memory_space<vmem>>, vector<64x128xf32>
    tpu.vector_store %arg3[%c0_5, %c0_6], %6 {strides = array<i32>} : memref<64x128xf32, #tpu.memory_space<vmem>>, vector<64x128xf32>,
    return
  }
}

module attributes {stable_mosaic.version = 11 : i64} {
  func.func @_encoder_kernel(%arg0: i32, %arg1: memref<32x32xf32, #tpu.memory_space<vmem>>, %arg2: memref<4x32x32xf32, #tpu.memory_space<vmem>>, %arg3: memref<32x32xbf16, #tpu.memory_space<vmem>>, %arg4: memref<1x32xf32, #tpu.memory_space<vmem>>, %arg5: memref<1x32x96xbf16, #tpu.memory_space<vmem>>, %arg6: memref<1x1x96xf32, #tpu.memory_space<vmem>>, %arg7: memref<1x32x32xbf16, #tpu.memory_space<vmem>>, %arg8: memref<1x1x32xf32, #tpu.memory_space<vmem>>, %arg9: memref<1x1x32xf32, #tpu.memory_space<vmem>>, %arg10: memref<1x1x32xf32, #tpu.memory_space<vmem>>, %arg11: memref<1x32x64xbf16, #tpu.memory_space<vmem>>, %arg12: memref<1x1x64xf32, #tpu.memory_space<vmem>>, %arg13: memref<1x64x32xbf16, #tpu.memory_space<vmem>>, %arg14: memref<1x1x32xf32, #tpu.memory_space<vmem>>, %arg15: memref<1x1x32xf32, #tpu.memory_space<vmem>>, %arg16: memref<1x1x32xf32, #tpu.memory_space<vmem>>, %arg17: memref<32x32xf32, #tpu.memory_space<vmem>>, %arg18: memref<32x32xf32, #tpu.memory_space<vmem>>) attributes {dimension_semantics = [#tpu.dimension_semantics<arbitrary>], iteration_bounds = array<i64: 2>, scalar_prefetch = 0 : i64, scratch_operands = 1 : i64, tpu.core_type = #tpu.core_type<tc>, window_params = [{pipeline_mode = #tpu.pipeline_mode<synchronous>, transform_indices = @transform_0, window_bounds = array<i64: 32, 32>}, {pipeline_mode = #tpu.pipeline_mode<synchronous>, transform_indices = @transform_1, window_bounds = array<i64: 4, 32, 32>}, {pipeline_mode = #tpu.pipeline_mode<synchronous>, transform_indices = @transform_2, window_bounds = array<i64: 32, 32>}, {pipeline_mode = #tpu.pipeline_mode<synchronous>, transform_indices = @transform_3, window_bounds = array<i64: 1, 32>}, {transform_indices = @transform_4, window_bounds = array<i64: 1, 32, 96>}, {transform_indices = @transform_5, window_bounds = array<i64: 1, 1, 96>}, {transform_indices = @transform_6, window_bounds = array<i64: 1, 32, 32>}, {transform_indices = @transform_7, window_bounds = array<i64: 1, 1, 32>}, {transform_indices = @transform_8, window_bounds = array<i64: 1, 1, 32>}, {transform_indices = @transform_9, window_bounds = array<i64: 1, 1, 32>}, {transform_indices = @transform_10, window_bounds = array<i64: 1, 32, 64>}, {transform_indices = @transform_11, window_bounds = array<i64: 1, 1, 64>}, {transform_indices = @transform_12, window_bounds = array<i64: 1, 64, 32>}, {transform_indices = @transform_13, window_bounds = array<i64: 1, 1, 32>}, {transform_indices = @transform_14, window_bounds = array<i64: 1, 1, 32>}, {transform_indices = @transform_15, window_bounds = array<i64: 1, 1, 32>}, {pipeline_mode = #tpu.pipeline_mode<synchronous>, transform_indices = @transform_16, window_bounds = array<i64: 32, 32>}]} {
    %c0_i32 = arith.constant 0 : i32
    %0 = arith.cmpi eq, %arg0, %c0_i32 : i32
    %1 = arith.extui %0 : i1 to i32
    %c0_i32_0 = arith.constant 0 : i32
    %2 = arith.cmpi ne, %1, %c0_i32_0 : i32
    scf.if %2 {
      %c0_88 = arith.constant 0 : index
      %c0_89 = arith.constant 0 : index
      %203 = vector.load %arg1[%c0_88, %c0_89] : memref<32x32xf32, #tpu.memory_space<vmem>>, vector<32x32xf32>
      %c0_90 = arith.constant 0 : index
      %c0_91 = arith.constant 0 : index
      %204 = vector.load %arg3[%c0_90, %c0_91] : memref<32x32xbf16, #tpu.memory_space<vmem>>, vector<32x32xbf16>
      %c0_92 = arith.constant 0 : index
      %c0_93 = arith.constant 0 : index
      %205 = vector.load %arg4[%c0_92, %c0_93] : memref<1x32xf32, #tpu.memory_space<vmem>>, vector<1x32xf32>
      %206 = arith.truncf %203 : vector<32x32xf32> to vector<32x32xbf16>
      %cst_94 = arith.constant dense<0.000000e+00> : vector<32x32xf32>
      %207 = tpu.matmul %206, %204, %cst_94 {dimension_numbers = #tpu.dot_dimension_numbers<[1], [0], [0], [1], [0, 0, 1, 1], [], []>} : vector<32x32xbf16>, vector<32x32xbf16>, vector<32x32xf32> -> vector<32x32xf32>
      %208 = vector.broadcast %205 : vector<1x32xf32> to vector<32x32xf32>
      %209 = arith.addf %207, %208 : vector<32x32xf32>
      %c0_95 = arith.constant 0 : index
      %c0_96 = arith.constant 0 : index
      %210 = vector.load %arg18[%c0_95, %c0_96] : memref<32x32xf32, #tpu.memory_space<vmem>>, vector<32x32xf32>
      tpu.vector_store %arg18[%c0_95, %c0_96], %209 {strides = array<i32>} : memref<32x32xf32, #tpu.memory_space<vmem>>, vector<32x32xf32>,
    } else {
    }
    %c0 = arith.constant 0 : index
    %c0_1 = arith.constant 0 : index
    %3 = vector.load %arg18[%c0, %c0_1] : memref<32x32xf32, #tpu.memory_space<vmem>>, vector<32x32xf32>
    %c0_2 = arith.constant 0 : index
    %c0_3 = arith.constant 0 : index
    %c0_4 = arith.constant 0 : index
    %4 = vector.load %arg5[%c0_2, %c0_3, %c0_4] : memref<1x32x96xbf16, #tpu.memory_space<vmem>>, vector<1x32x96xbf16>
    %5 = vector.shape_cast %4 : vector<1x32x96xbf16> to vector<32x96xbf16>
    %c0_5 = arith.constant 0 : index
    %c0_6 = arith.constant 0 : index
    %c0_7 = arith.constant 0 : index
    %6 = vector.load %arg6[%c0_5, %c0_6, %c0_7] : memref<1x1x96xf32, #tpu.memory_space<vmem>>, vector<1x1x96xf32>
    %7 = vector.shape_cast %6 : vector<1x1x96xf32> to vector<1x96xf32>
    %8 = arith.truncf %3 : vector<32x32xf32> to vector<32x32xbf16>
    %cst = arith.constant dense<0.000000e+00> : vector<32x96xf32>
    %9 = tpu.matmul %8, %5, %cst {dimension_numbers = #tpu.dot_dimension_numbers<[1], [0], [0], [1], [0, 0, 1, 1], [], []>} : vector<32x32xbf16>, vector<32x96xbf16>, vector<32x96xf32> -> vector<32x96xf32>
    %10 = vector.broadcast %7 : vector<1x96xf32> to vector<32x96xf32>
    %11 = arith.addf %9, %10 : vector<32x96xf32>
    %c0_8 = arith.constant 0 : index
    %c0_9 = arith.constant 0 : index
    %c0_10 = arith.constant 0 : index
    %12 = vector.load %arg7[%c0_8, %c0_9, %c0_10] : memref<1x32x32xbf16, #tpu.memory_space<vmem>>, vector<1x32x32xbf16>
    %13 = vector.shape_cast %12 : vector<1x32x32xbf16> to vector<32x32xbf16>
    %cst_11 = arith.constant 0.000000e+00 : f32
    %14 = vector.broadcast %cst_11 : f32 to vector<32x32xf32>
    %15 = vector.extract_strided_slice %11 {offsets = [0, 0], sizes = [32, 8], strides = [1, 1]} : vector<32x96xf32> to vector<32x8xf32>
    %16 = arith.truncf %15 : vector<32x8xf32> to vector<32x8xbf16>
    %17 = vector.extract_strided_slice %11 {offsets = [0, 32], sizes = [32, 8], strides = [1, 1]} : vector<32x96xf32> to vector<32x8xf32>
    %18 = arith.truncf %17 : vector<32x8xf32> to vector<32x8xbf16>
    %19 = vector.extract_strided_slice %11 {offsets = [0, 64], sizes = [32, 8], strides = [1, 1]} : vector<32x96xf32> to vector<32x8xf32>
    %20 = arith.truncf %19 : vector<32x8xf32> to vector<32x8xbf16>
    %cst_12 = arith.constant dense<0.000000e+00> : vector<32x32xf32>
    %21 = tpu.matmul %16, %18, %cst_12 {dimension_numbers = #tpu.dot_dimension_numbers<[1], [1], [0], [0], [0, 0, 1, 0], [], []>} : vector<32x8xbf16>, vector<32x8xbf16>, vector<32x32xf32> -> vector<32x32xf32>
    %cst_13 = arith.constant 0.353553385 : f32
    %22 = vector.broadcast %cst_13 : f32 to vector<32x32xf32>
    %23 = arith.mulf %21, %22 : vector<32x32xf32>
    %c0_14 = arith.constant 0 : index
    %c0_15 = arith.constant 0 : index
    %c0_16 = arith.constant 0 : index
    %24 = vector.load %arg2[%c0_14, %c0_15, %c0_16] : memref<4x32x32xf32, #tpu.memory_space<vmem>>, vector<1x32x32xf32>
    %25 = vector.shape_cast %24 : vector<1x32x32xf32> to vector<32x32xf32>
    %26 = arith.addf %23, %25 : vector<32x32xf32>
    %cst_17 = arith.constant dense<0xFF800000> : vector<32xf32>
    %27 = vector.multi_reduction <maximumf>, %26, %cst_17 [1] : vector<32x32xf32> to vector<32xf32>
    %28 = vector.shape_cast %27 : vector<32xf32> to vector<32x1xf32>
    %29 = vector.broadcast %28 : vector<32x1xf32> to vector<32x32xf32>
    %30 = arith.subf %26, %29 : vector<32x32xf32>
    %31 = math.exp %30 : vector<32x32xf32>
    %cst_18 = arith.constant dense<0.000000e+00> : vector<32xf32>
    %32 = vector.multi_reduction <add>, %31, %cst_18 [1] : vector<32x32xf32> to vector<32xf32>
    %33 = vector.shape_cast %32 : vector<32xf32> to vector<32x1xf32>
    %34 = tpu.reciprocal %33 {approx = true} : vector<32x1xf32> -> vector<32x1xf32>
    %35 = vector.broadcast %34 : vector<32x1xf32> to vector<32x32xf32>
    %36 = arith.mulf %31, %35 : vector<32x32xf32>
    %37 = arith.truncf %36 : vector<32x32xf32> to vector<32x32xbf16>
    %cst_19 = arith.constant dense<0.000000e+00> : vector<32x8xf32>
    %38 = tpu.matmul %37, %20, %cst_19 {dimension_numbers = #tpu.dot_dimension_numbers<[1], [0], [0], [1], [0, 0, 1, 1], [], []>} : vector<32x32xbf16>, vector<32x8xbf16>, vector<32x8xf32> -> vector<32x8xf32>
    %39 = arith.truncf %38 : vector<32x8xf32> to vector<32x8xbf16>
    %40 = vector.extract_strided_slice %13 {offsets = [0, 0], sizes = [8, 32], strides = [1, 1]} : vector<32x32xbf16> to vector<8x32xbf16>
    %cst_20 = arith.constant dense<0.000000e+00> : vector<32x32xf32>
    %41 = tpu.matmul %39, %40, %cst_20 {dimension_numbers = #tpu.dot_dimension_numbers<[1], [0], [0], [1], [0, 0, 1, 1], [], []>} : vector<32x8xbf16>, vector<8x32xbf16>, vector<32x32xf32> -> vector<32x32xf32>
    %42 = arith.addf %14, %41 : vector<32x32xf32>
    %43 = vector.extract_strided_slice %11 {offsets = [0, 8], sizes = [32, 8], strides = [1, 1]} : vector<32x96xf32> to vector<32x8xf32>
    %44 = arith.truncf %43 : vector<32x8xf32> to vector<32x8xbf16>
    %45 = vector.extract_strided_slice %11 {offsets = [0, 40], sizes = [32, 8], strides = [1, 1]} : vector<32x96xf32> to vector<32x8xf32>
    %46 = arith.truncf %45 : vector<32x8xf32> to vector<32x8xbf16>
    %47 = vector.extract_strided_slice %11 {offsets = [0, 72], sizes = [32, 8], strides = [1, 1]} : vector<32x96xf32> to vector<32x8xf32>
    %48 = arith.truncf %47 : vector<32x8xf32> to vector<32x8xbf16>
    %cst_21 = arith.constant dense<0.000000e+00> : vector<32x32xf32>
    %49 = tpu.matmul %44, %46, %cst_21 {dimension_numbers = #tpu.dot_dimension_numbers<[1], [1], [0], [0], [0, 0, 1, 0], [], []>} : vector<32x8xbf16>, vector<32x8xbf16>, vector<32x32xf32> -> vector<32x32xf32>
    %cst_22 = arith.constant 0.353553385 : f32
    %50 = vector.broadcast %cst_22 : f32 to vector<32x32xf32>
    %51 = arith.mulf %49, %50 : vector<32x32xf32>
    %c1 = arith.constant 1 : index
    %c0_23 = arith.constant 0 : index
    %c0_24 = arith.constant 0 : index
    %52 = vector.load %arg2[%c1, %c0_23, %c0_24] : memref<4x32x32xf32, #tpu.memory_space<vmem>>, vector<1x32x32xf32>
    %53 = vector.shape_cast %52 : vector<1x32x32xf32> to vector<32x32xf32>
    %54 = arith.addf %51, %53 : vector<32x32xf32>
    %cst_25 = arith.constant dense<0xFF800000> : vector<32xf32>
    %55 = vector.multi_reduction <maximumf>, %54, %cst_25 [1] : vector<32x32xf32> to vector<32xf32>
    %56 = vector.shape_cast %55 : vector<32xf32> to vector<32x1xf32>
    %57 = vector.broadcast %56 : vector<32x1xf32> to vector<32x32xf32>
    %58 = arith.subf %54, %57 : vector<32x32xf32>
    %59 = math.exp %58 : vector<32x32xf32>
    %cst_26 = arith.constant dense<0.000000e+00> : vector<32xf32>
    %60 = vector.multi_reduction <add>, %59, %cst_26 [1] : vector<32x32xf32> to vector<32xf32>
    %61 = vector.shape_cast %60 : vector<32xf32> to vector<32x1xf32>
    %62 = tpu.reciprocal %61 {approx = true} : vector<32x1xf32> -> vector<32x1xf32>
    %63 = vector.broadcast %62 : vector<32x1xf32> to vector<32x32xf32>
    %64 = arith.mulf %59, %63 : vector<32x32xf32>
    %65 = arith.truncf %64 : vector<32x32xf32> to vector<32x32xbf16>
    %cst_27 = arith.constant dense<0.000000e+00> : vector<32x8xf32>
    %66 = tpu.matmul %65, %48, %cst_27 {dimension_numbers = #tpu.dot_dimension_numbers<[1], [0], [0], [1], [0, 0, 1, 1], [], []>} : vector<32x32xbf16>, vector<32x8xbf16>, vector<32x8xf32> -> vector<32x8xf32>
    %67 = arith.truncf %66 : vector<32x8xf32> to vector<32x8xbf16>
    %68 = vector.extract_strided_slice %13 {offsets = [8, 0], sizes = [8, 32], strides = [1, 1]} : vector<32x32xbf16> to vector<8x32xbf16>
    %cst_28 = arith.constant dense<0.000000e+00> : vector<32x32xf32>
    %69 = tpu.matmul %67, %68, %cst_28 {dimension_numbers = #tpu.dot_dimension_numbers<[1], [0], [0], [1], [0, 0, 1, 1], [], []>} : vector<32x8xbf16>, vector<8x32xbf16>, vector<32x32xf32> -> vector<32x32xf32>
    %70 = arith.addf %42, %69 : vector<32x32xf32>
    %71 = vector.extract_strided_slice %11 {offsets = [0, 16], sizes = [32, 8], strides = [1, 1]} : vector<32x96xf32> to vector<32x8xf32>
    %72 = arith.truncf %71 : vector<32x8xf32> to vector<32x8xbf16>
    %73 = vector.extract_strided_slice %11 {offsets = [0, 48], sizes = [32, 8], strides = [1, 1]} : vector<32x96xf32> to vector<32x8xf32>
    %74 = arith.truncf %73 : vector<32x8xf32> to vector<32x8xbf16>
    %75 = vector.extract_strided_slice %11 {offsets = [0, 80], sizes = [32, 8], strides = [1, 1]} : vector<32x96xf32> to vector<32x8xf32>
    %76 = arith.truncf %75 : vector<32x8xf32> to vector<32x8xbf16>
    %cst_29 = arith.constant dense<0.000000e+00> : vector<32x32xf32>
    %77 = tpu.matmul %72, %74, %cst_29 {dimension_numbers = #tpu.dot_dimension_numbers<[1], [1], [0], [0], [0, 0, 1, 0], [], []>} : vector<32x8xbf16>, vector<32x8xbf16>, vector<32x32xf32> -> vector<32x32xf32>
    %cst_30 = arith.constant 0.353553385 : f32
    %78 = vector.broadcast %cst_30 : f32 to vector<32x32xf32>
    %79 = arith.mulf %77, %78 : vector<32x32xf32>
    %c2 = arith.constant 2 : index
    %c0_31 = arith.constant 0 : index
    %c0_32 = arith.constant 0 : index
    %80 = vector.load %arg2[%c2, %c0_31, %c0_32] : memref<4x32x32xf32, #tpu.memory_space<vmem>>, vector<1x32x32xf32>
    %81 = vector.shape_cast %80 : vector<1x32x32xf32> to vector<32x32xf32>
    %82 = arith.addf %79, %81 : vector<32x32xf32>
    %cst_33 = arith.constant dense<0xFF800000> : vector<32xf32>
    %83 = vector.multi_reduction <maximumf>, %82, %cst_33 [1] : vector<32x32xf32> to vector<32xf32>
    %84 = vector.shape_cast %83 : vector<32xf32> to vector<32x1xf32>
    %85 = vector.broadcast %84 : vector<32x1xf32> to vector<32x32xf32>
    %86 = arith.subf %82, %85 : vector<32x32xf32>
    %87 = math.exp %86 : vector<32x32xf32>
    %cst_34 = arith.constant dense<0.000000e+00> : vector<32xf32>
    %88 = vector.multi_reduction <add>, %87, %cst_34 [1] : vector<32x32xf32> to vector<32xf32>
    %89 = vector.shape_cast %88 : vector<32xf32> to vector<32x1xf32>
    %90 = tpu.reciprocal %89 {approx = true} : vector<32x1xf32> -> vector<32x1xf32>
    %91 = vector.broadcast %90 : vector<32x1xf32> to vector<32x32xf32>
    %92 = arith.mulf %87, %91 : vector<32x32xf32>
    %93 = arith.truncf %92 : vector<32x32xf32> to vector<32x32xbf16>
    %cst_35 = arith.constant dense<0.000000e+00> : vector<32x8xf32>
    %94 = tpu.matmul %93, %76, %cst_35 {dimension_numbers = #tpu.dot_dimension_numbers<[1], [0], [0], [1], [0, 0, 1, 1], [], []>} : vector<32x32xbf16>, vector<32x8xbf16>, vector<32x8xf32> -> vector<32x8xf32>
    %95 = arith.truncf %94 : vector<32x8xf32> to vector<32x8xbf16>
    %96 = vector.extract_strided_slice %13 {offsets = [16, 0], sizes = [8, 32], strides = [1, 1]} : vector<32x32xbf16> to vector<8x32xbf16>
    %cst_36 = arith.constant dense<0.000000e+00> : vector<32x32xf32>
    %97 = tpu.matmul %95, %96, %cst_36 {dimension_numbers = #tpu.dot_dimension_numbers<[1], [0], [0], [1], [0, 0, 1, 1], [], []>} : vector<32x8xbf16>, vector<8x32xbf16>, vector<32x32xf32> -> vector<32x32xf32>
    %98 = arith.addf %70, %97 : vector<32x32xf32>
    %99 = vector.extract_strided_slice %11 {offsets = [0, 24], sizes = [32, 8], strides = [1, 1]} : vector<32x96xf32> to vector<32x8xf32>
    %100 = arith.truncf %99 : vector<32x8xf32> to vector<32x8xbf16>
    %101 = vector.extract_strided_slice %11 {offsets = [0, 56], sizes = [32, 8], strides = [1, 1]} : vector<32x96xf32> to vector<32x8xf32>
    %102 = arith.truncf %101 : vector<32x8xf32> to vector<32x8xbf16>
    %103 = vector.extract_strided_slice %11 {offsets = [0, 88], sizes = [32, 8], strides = [1, 1]} : vector<32x96xf32> to vector<32x8xf32>
    %104 = arith.truncf %103 : vector<32x8xf32> to vector<32x8xbf16>
    %cst_37 = arith.constant dense<0.000000e+00> : vector<32x32xf32>
    %105 = tpu.matmul %100, %102, %cst_37 {dimension_numbers = #tpu.dot_dimension_numbers<[1], [1], [0], [0], [0, 0, 1, 0], [], []>} : vector<32x8xbf16>, vector<32x8xbf16>, vector<32x32xf32> -> vector<32x32xf32>
    %cst_38 = arith.constant 0.353553385 : f32
    %106 = vector.broadcast %cst_38 : f32 to vector<32x32xf32>
    %107 = arith.mulf %105, %106 : vector<32x32xf32>
    %c3 = arith.constant 3 : index
    %c0_39 = arith.constant 0 : index
    %c0_40 = arith.constant 0 : index
    %108 = vector.load %arg2[%c3, %c0_39, %c0_40] : memref<4x32x32xf32, #tpu.memory_space<vmem>>, vector<1x32x32xf32>
    %109 = vector.shape_cast %108 : vector<1x32x32xf32> to vector<32x32xf32>
    %110 = arith.addf %107, %109 : vector<32x32xf32>
    %cst_41 = arith.constant dense<0xFF800000> : vector<32xf32>
    %111 = vector.multi_reduction <maximumf>, %110, %cst_41 [1] : vector<32x32xf32> to vector<32xf32>
    %112 = vector.shape_cast %111 : vector<32xf32> to vector<32x1xf32>
    %113 = vector.broadcast %112 : vector<32x1xf32> to vector<32x32xf32>
    %114 = arith.subf %110, %113 : vector<32x32xf32>
    %115 = math.exp %114 : vector<32x32xf32>
    %cst_42 = arith.constant dense<0.000000e+00> : vector<32xf32>
    %116 = vector.multi_reduction <add>, %115, %cst_42 [1] : vector<32x32xf32> to vector<32xf32>
    %117 = vector.shape_cast %116 : vector<32xf32> to vector<32x1xf32>
    %118 = tpu.reciprocal %117 {approx = true} : vector<32x1xf32> -> vector<32x1xf32>
    %119 = vector.broadcast %118 : vector<32x1xf32> to vector<32x32xf32>
    %120 = arith.mulf %115, %119 : vector<32x32xf32>
    %121 = arith.truncf %120 : vector<32x32xf32> to vector<32x32xbf16>
    %cst_43 = arith.constant dense<0.000000e+00> : vector<32x8xf32>
    %122 = tpu.matmul %121, %104, %cst_43 {dimension_numbers = #tpu.dot_dimension_numbers<[1], [0], [0], [1], [0, 0, 1, 1], [], []>} : vector<32x32xbf16>, vector<32x8xbf16>, vector<32x8xf32> -> vector<32x8xf32>
    %123 = arith.truncf %122 : vector<32x8xf32> to vector<32x8xbf16>
    %124 = vector.extract_strided_slice %13 {offsets = [24, 0], sizes = [8, 32], strides = [1, 1]} : vector<32x32xbf16> to vector<8x32xbf16>
    %cst_44 = arith.constant dense<0.000000e+00> : vector<32x32xf32>
    %125 = tpu.matmul %123, %124, %cst_44 {dimension_numbers = #tpu.dot_dimension_numbers<[1], [0], [0], [1], [0, 0, 1, 1], [], []>} : vector<32x8xbf16>, vector<8x32xbf16>, vector<32x32xf32> -> vector<32x32xf32>
    %126 = arith.addf %98, %125 : vector<32x32xf32>
    %c0_45 = arith.constant 0 : index
    %c0_46 = arith.constant 0 : index
    %c0_47 = arith.constant 0 : index
    %127 = vector.load %arg8[%c0_45, %c0_46, %c0_47] : memref<1x1x32xf32, #tpu.memory_space<vmem>>, vector<1x1x32xf32>
    %128 = vector.shape_cast %127 : vector<1x1x32xf32> to vector<1x32xf32>
    %129 = vector.broadcast %128 : vector<1x32xf32> to vector<32x32xf32>
    %130 = arith.addf %126, %129 : vector<32x32xf32>
    %131 = arith.addf %3, %130 : vector<32x32xf32>
    %c0_48 = arith.constant 0 : index
    %c0_49 = arith.constant 0 : index
    %c0_50 = arith.constant 0 : index
    %132 = vector.load %arg9[%c0_48, %c0_49, %c0_50] : memref<1x1x32xf32, #tpu.memory_space<vmem>>, vector<1x1x32xf32>
    %133 = vector.shape_cast %132 : vector<1x1x32xf32> to vector<1x32xf32>
    %c0_51 = arith.constant 0 : index
    %c0_52 = arith.constant 0 : index
    %c0_53 = arith.constant 0 : index
    %134 = vector.load %arg10[%c0_51, %c0_52, %c0_53] : memref<1x1x32xf32, #tpu.memory_space<vmem>>, vector<1x1x32xf32>
    %135 = vector.shape_cast %134 : vector<1x1x32xf32> to vector<1x32xf32>
    %cst_54 = arith.constant dense<0.000000e+00> : vector<32xf32>
    %136 = vector.multi_reduction <add>, %131, %cst_54 [1] : vector<32x32xf32> to vector<32xf32>
    %137 = vector.shape_cast %136 : vector<32xf32> to vector<32x1xf32>
    %cst_55 = arith.constant 3.200000e+01 : f32
    %138 = vector.broadcast %cst_55 : f32 to vector<32x1xf32>
    %139 = arith.divf %137, %138 : vector<32x1xf32>
    %140 = vector.broadcast %139 : vector<32x1xf32> to vector<32x32xf32>
    %141 = arith.subf %131, %140 : vector<32x32xf32>
    %142 = arith.mulf %141, %141 : vector<32x32xf32>
    %cst_56 = arith.constant dense<0.000000e+00> : vector<32xf32>
    %143 = vector.multi_reduction <add>, %142, %cst_56 [1] : vector<32x32xf32> to vector<32xf32>
    %144 = vector.shape_cast %143 : vector<32xf32> to vector<32x1xf32>
    %cst_57 = arith.constant 3.200000e+01 : f32
    %145 = vector.broadcast %cst_57 : f32 to vector<32x1xf32>
    %146 = arith.divf %144, %145 : vector<32x1xf32>
    %cst_58 = arith.constant 9.99999974E-6 : f32
    %147 = vector.broadcast %cst_58 : f32 to vector<32x1xf32>
    %148 = arith.addf %146, %147 : vector<32x1xf32>
    %149 = math.rsqrt %148 : vector<32x1xf32>
    %150 = vector.broadcast %149 : vector<32x1xf32> to vector<32x32xf32>
    %151 = arith.mulf %141, %150 : vector<32x32xf32>
    %152 = vector.broadcast %133 : vector<1x32xf32> to vector<32x32xf32>
    %153 = arith.mulf %151, %152 : vector<32x32xf32>
    %154 = vector.broadcast %135 : vector<1x32xf32> to vector<32x32xf32>
    %155 = arith.addf %153, %154 : vector<32x32xf32>
    %c0_59 = arith.constant 0 : index
    %c0_60 = arith.constant 0 : index
    %c0_61 = arith.constant 0 : index
    %156 = vector.load %arg11[%c0_59, %c0_60, %c0_61] : memref<1x32x64xbf16, #tpu.memory_space<vmem>>, vector<1x32x64xbf16>
    %157 = vector.shape_cast %156 : vector<1x32x64xbf16> to vector<32x64xbf16>
    %c0_62 = arith.constant 0 : index
    %c0_63 = arith.constant 0 : index
    %c0_64 = arith.constant 0 : index
    %158 = vector.load %arg12[%c0_62, %c0_63, %c0_64] : memref<1x1x64xf32, #tpu.memory_space<vmem>>, vector<1x1x64xf32>
    %159 = vector.shape_cast %158 : vector<1x1x64xf32> to vector<1x64xf32>
    %160 = arith.truncf %155 : vector<32x32xf32> to vector<32x32xbf16>
    %cst_65 = arith.constant dense<0.000000e+00> : vector<32x64xf32>
    %161 = tpu.matmul %160, %157, %cst_65 {dimension_numbers = #tpu.dot_dimension_numbers<[1], [0], [0], [1], [0, 0, 1, 1], [], []>} : vector<32x32xbf16>, vector<32x64xbf16>, vector<32x64xf32> -> vector<32x64xf32>
    %162 = vector.broadcast %159 : vector<1x64xf32> to vector<32x64xf32>
    %163 = arith.addf %161, %162 : vector<32x64xf32>
    %cst_66 = arith.constant 0.000000e+00 : f32
    %164 = vector.broadcast %cst_66 : f32 to vector<32x64xf32>
    %165 = arith.maximumf %163, %164 : vector<32x64xf32>
    %c0_67 = arith.constant 0 : index
    %c0_68 = arith.constant 0 : index
    %c0_69 = arith.constant 0 : index
    %166 = vector.load %arg13[%c0_67, %c0_68, %c0_69] : memref<1x64x32xbf16, #tpu.memory_space<vmem>>, vector<1x64x32xbf16>
    %167 = vector.shape_cast %166 : vector<1x64x32xbf16> to vector<64x32xbf16>
    %c0_70 = arith.constant 0 : index
    %c0_71 = arith.constant 0 : index
    %c0_72 = arith.constant 0 : index
    %168 = vector.load %arg14[%c0_70, %c0_71, %c0_72] : memref<1x1x32xf32, #tpu.memory_space<vmem>>, vector<1x1x32xf32>
    %169 = vector.shape_cast %168 : vector<1x1x32xf32> to vector<1x32xf32>
    %170 = arith.truncf %165 : vector<32x64xf32> to vector<32x64xbf16>
    %cst_73 = arith.constant dense<0.000000e+00> : vector<32x32xf32>
    %171 = tpu.matmul %170, %167, %cst_73 {dimension_numbers = #tpu.dot_dimension_numbers<[1], [0], [0], [1], [0, 0, 1, 1], [], []>} : vector<32x64xbf16>, vector<64x32xbf16>, vector<32x32xf32> -> vector<32x32xf32>
    %172 = vector.broadcast %169 : vector<1x32xf32> to vector<32x32xf32>
    %173 = arith.addf %171, %172 : vector<32x32xf32>
    %174 = arith.addf %155, %173 : vector<32x32xf32>
    %c0_74 = arith.constant 0 : index
    %c0_75 = arith.constant 0 : index
    %c0_76 = arith.constant 0 : index
    %175 = vector.load %arg15[%c0_74, %c0_75, %c0_76] : memref<1x1x32xf32, #tpu.memory_space<vmem>>, vector<1x1x32xf32>
    %176 = vector.shape_cast %175 : vector<1x1x32xf32> to vector<1x32xf32>
    %c0_77 = arith.constant 0 : index
    %c0_78 = arith.constant 0 : index
    %c0_79 = arith.constant 0 : index
    %177 = vector.load %arg16[%c0_77, %c0_78, %c0_79] : memref<1x1x32xf32, #tpu.memory_space<vmem>>, vector<1x1x32xf32>
    %178 = vector.shape_cast %177 : vector<1x1x32xf32> to vector<1x32xf32>
    %cst_80 = arith.constant dense<0.000000e+00> : vector<32xf32>
    %179 = vector.multi_reduction <add>, %174, %cst_80 [1] : vector<32x32xf32> to vector<32xf32>
    %180 = vector.shape_cast %179 : vector<32xf32> to vector<32x1xf32>
    %cst_81 = arith.constant 3.200000e+01 : f32
    %181 = vector.broadcast %cst_81 : f32 to vector<32x1xf32>
    %182 = arith.divf %180, %181 : vector<32x1xf32>
    %183 = vector.broadcast %182 : vector<32x1xf32> to vector<32x32xf32>
    %184 = arith.subf %174, %183 : vector<32x32xf32>
    %185 = arith.mulf %184, %184 : vector<32x32xf32>
    %cst_82 = arith.constant dense<0.000000e+00> : vector<32xf32>
    %186 = vector.multi_reduction <add>, %185, %cst_82 [1] : vector<32x32xf32> to vector<32xf32>
    %187 = vector.shape_cast %186 : vector<32xf32> to vector<32x1xf32>
    %cst_83 = arith.constant 3.200000e+01 : f32
    %188 = vector.broadcast %cst_83 : f32 to vector<32x1xf32>
    %189 = arith.divf %187, %188 : vector<32x1xf32>
    %cst_84 = arith.constant 9.99999974E-6 : f32
    %190 = vector.broadcast %cst_84 : f32 to vector<32x1xf32>
    %191 = arith.addf %189, %190 : vector<32x1xf32>
    %192 = math.rsqrt %191 : vector<32x1xf32>
    %193 = vector.broadcast %192 : vector<32x1xf32> to vector<32x32xf32>
    %194 = arith.mulf %184, %193 : vector<32x32xf32>
    %195 = vector.broadcast %176 : vector<1x32xf32> to vector<32x32xf32>
    %196 = arith.mulf %194, %195 : vector<32x32xf32>
    %197 = vector.broadcast %178 : vector<1x32xf32> to vector<32x32xf32>
    %198 = arith.addf %196, %197 : vector<32x32xf32>
    %c0_85 = arith.constant 0 : index
    %c0_86 = arith.constant 0 : index
    %199 = vector.load %arg18[%c0_85, %c0_86] : memref<32x32xf32, #tpu.memory_space<vmem>>, vector<32x32xf32>
    tpu.vector_store %arg18[%c0_85, %c0_86], %198 {strides = array<i32>} : memref<32x32xf32, #tpu.memory_space<vmem>>, vector<32x32xf32>,
    %c1_i32 = arith.constant 1 : i32
    %200 = arith.cmpi eq, %arg0, %c1_i32 : i32
    %201 = arith.extui %200 : i1 to i32
    %c0_i32_87 = arith.constant 0 : i32
    %202 = arith.cmpi ne, %201, %c0_i32_87 : i32
    scf.if %202 {
      %c0_88 = arith.constant 0 : index
      %c0_89 = arith.constant 0 : index
      %203 = vector.load %arg17[%c0_88, %c0_89] : memref<32x32xf32, #tpu.memory_space<vmem>>, vector<32x32xf32>
      tpu.vector_store %arg17[%c0_88, %c0_89], %198 {strides = array<i32>} : memref<32x32xf32, #tpu.memory_space<vmem>>, vector<32x32xf32>,
    } else {
    }
    return
  }
  func.func @transform_0(%arg0: i32) -> (i32, i32) {
    %c0_i32 = arith.constant 0 : i32
    %c0_i32_0 = arith.constant 0 : i32
    %c0_i32_1 = arith.constant 0 : i32
    return %c0_i32, %c0_i32_0 : i32, i32
  }
  func.func @transform_1(%arg0: i32) -> (i32, i32, i32) {
    %c0_i32 = arith.constant 0 : i32
    %c0_i32_0 = arith.constant 0 : i32
    %c0_i32_1 = arith.constant 0 : i32
    %c0_i32_2 = arith.constant 0 : i32
    return %c0_i32, %c0_i32_0, %c0_i32_1 : i32, i32, i32
  }
  func.func @transform_2(%arg0: i32) -> (i32, i32) {
    %c0_i32 = arith.constant 0 : i32
    %c0_i32_0 = arith.constant 0 : i32
    %c0_i32_1 = arith.constant 0 : i32
    return %c0_i32, %c0_i32_0 : i32, i32
  }
  func.func @transform_3(%arg0: i32) -> (i32, i32) {
    %c0_i32 = arith.constant 0 : i32
    %c0_i32_0 = arith.constant 0 : i32
    %c0_i32_1 = arith.constant 0 : i32
    return %c0_i32, %c0_i32_0 : i32, i32
  }
  func.func @transform_4(%arg0: i32) -> (i32, i32, i32) {
    %c0_i32 = arith.constant 0 : i32
    %c0_i32_0 = arith.constant 0 : i32
    %c0_i32_1 = arith.constant 0 : i32
    return %arg0, %c0_i32, %c0_i32_0 : i32, i32, i32
  }
  func.func @transform_5(%arg0: i32) -> (i32, i32, i32) {
    %c0_i32 = arith.constant 0 : i32
    %c0_i32_0 = arith.constant 0 : i32
    %c0_i32_1 = arith.constant 0 : i32
    return %arg0, %c0_i32, %c0_i32_0 : i32, i32, i32
  }
  func.func @transform_6(%arg0: i32) -> (i32, i32, i32) {
    %c0_i32 = arith.constant 0 : i32
    %c0_i32_0 = arith.constant 0 : i32
    %c0_i32_1 = arith.constant 0 : i32
    return %arg0, %c0_i32, %c0_i32_0 : i32, i32, i32
  }
  func.func @transform_7(%arg0: i32) -> (i32, i32, i32) {
    %c0_i32 = arith.constant 0 : i32
    %c0_i32_0 = arith.constant 0 : i32
    %c0_i32_1 = arith.constant 0 : i32
    return %arg0, %c0_i32, %c0_i32_0 : i32, i32, i32
  }
  func.func @transform_8(%arg0: i32) -> (i32, i32, i32) {
    %c0_i32 = arith.constant 0 : i32
    %c0_i32_0 = arith.constant 0 : i32
    %c0_i32_1 = arith.constant 0 : i32
    return %arg0, %c0_i32, %c0_i32_0 : i32, i32, i32
  }
  func.func @transform_9(%arg0: i32) -> (i32, i32, i32) {
    %c0_i32 = arith.constant 0 : i32
    %c0_i32_0 = arith.constant 0 : i32
    %c0_i32_1 = arith.constant 0 : i32
    return %arg0, %c0_i32, %c0_i32_0 : i32, i32, i32
  }
  func.func @transform_10(%arg0: i32) -> (i32, i32, i32) {
    %c0_i32 = arith.constant 0 : i32
    %c0_i32_0 = arith.constant 0 : i32
    %c0_i32_1 = arith.constant 0 : i32
    return %arg0, %c0_i32, %c0_i32_0 : i32, i32, i32
  }
  func.func @transform_11(%arg0: i32) -> (i32, i32, i32) {
    %c0_i32 = arith.constant 0 : i32
    %c0_i32_0 = arith.constant 0 : i32
    %c0_i32_1 = arith.constant 0 : i32
    return %arg0, %c0_i32, %c0_i32_0 : i32, i32, i32
  }
  func.func @transform_12(%arg0: i32) -> (i32, i32, i32) {
    %c0_i32 = arith.constant 0 : i32
    %c0_i32_0 = arith.constant 0 : i32
    %c0_i32_1 = arith.constant 0 : i32
    return %arg0, %c0_i32, %c0_i32_0 : i32, i32, i32
  }
  func.func @transform_13(%arg0: i32) -> (i32, i32, i32) {
    %c0_i32 = arith.constant 0 : i32
    %c0_i32_0 = arith.constant 0 : i32
    %c0_i32_1 = arith.constant 0 : i32
    return %arg0, %c0_i32, %c0_i32_0 : i32, i32, i32
  }
  func.func @transform_14(%arg0: i32) -> (i32, i32, i32) {
    %c0_i32 = arith.constant 0 : i32
    %c0_i32_0 = arith.constant 0 : i32
    %c0_i32_1 = arith.constant 0 : i32
    return %arg0, %c0_i32, %c0_i32_0 : i32, i32, i32
  }
  func.func @transform_15(%arg0: i32) -> (i32, i32, i32) {
    %c0_i32 = arith.constant 0 : i32
    %c0_i32_0 = arith.constant 0 : i32
    %c0_i32_1 = arith.constant 0 : i32
    return %arg0, %c0_i32, %c0_i32_0 : i32, i32, i32
  }
  func.func @transform_16(%arg0: i32) -> (i32, i32) {
    %c0_i32 = arith.constant 0 : i32
    %c0_i32_0 = arith.constant 0 : i32
    %c0_i32_1 = arith.constant 0 : i32
    return %c0_i32, %c0_i32_0 : i32, i32
  }
}

module attributes {stable_mosaic.version = 11 : i64} {
  func.func @_mech_kernel(%arg0: i32, %arg1: memref<1x24x160xf32, #tpu.memory_space<vmem>>, %arg2: memref<1x160x32xbf16, #tpu.memory_space<vmem>>, %arg3: memref<1x1x32xf32, #tpu.memory_space<vmem>>, %arg4: memref<1x32x32xbf16, #tpu.memory_space<vmem>>, %arg5: memref<1x1x32xf32, #tpu.memory_space<vmem>>, %arg6: memref<1x32x128xbf16, #tpu.memory_space<vmem>>, %arg7: memref<1x1x128xf32, #tpu.memory_space<vmem>>, %arg8: memref<1x24x128xf32, #tpu.memory_space<vmem>>) attributes {dimension_semantics = [#tpu.dimension_semantics<parallel>], iteration_bounds = array<i64: 3>, scalar_prefetch = 0 : i64, scratch_operands = 0 : i64, tpu.core_type = #tpu.core_type<tc>, window_params = [{transform_indices = @transform_0, window_bounds = array<i64: 1, 24, 160>}, {transform_indices = @transform_1, window_bounds = array<i64: 1, 160, 32>}, {transform_indices = @transform_2, window_bounds = array<i64: 1, 1, 32>}, {transform_indices = @transform_3, window_bounds = array<i64: 1, 32, 32>}, {transform_indices = @transform_4, window_bounds = array<i64: 1, 1, 32>}, {transform_indices = @transform_5, window_bounds = array<i64: 1, 32, 128>}, {transform_indices = @transform_6, window_bounds = array<i64: 1, 1, 128>}, {transform_indices = @transform_7, window_bounds = array<i64: 1, 24, 128>}]} {
    %c0 = arith.constant 0 : index
    %c0_0 = arith.constant 0 : index
    %c0_1 = arith.constant 0 : index
    %0 = vector.load %arg1[%c0, %c0_0, %c0_1] : memref<1x24x160xf32, #tpu.memory_space<vmem>>, vector<1x24x160xf32>
    %1 = vector.shape_cast %0 : vector<1x24x160xf32> to vector<24x160xf32>
    %c0_2 = arith.constant 0 : index
    %c0_3 = arith.constant 0 : index
    %c0_4 = arith.constant 0 : index
    %2 = vector.load %arg2[%c0_2, %c0_3, %c0_4] : memref<1x160x32xbf16, #tpu.memory_space<vmem>>, vector<1x160x32xbf16>
    %3 = vector.shape_cast %2 : vector<1x160x32xbf16> to vector<160x32xbf16>
    %c0_5 = arith.constant 0 : index
    %c0_6 = arith.constant 0 : index
    %c0_7 = arith.constant 0 : index
    %4 = vector.load %arg3[%c0_5, %c0_6, %c0_7] : memref<1x1x32xf32, #tpu.memory_space<vmem>>, vector<1x1x32xf32>
    %5 = vector.shape_cast %4 : vector<1x1x32xf32> to vector<1x32xf32>
    %6 = arith.truncf %1 : vector<24x160xf32> to vector<24x160xbf16>
    %cst = arith.constant dense<0.000000e+00> : vector<24x32xf32>
    %7 = tpu.matmul %6, %3, %cst {dimension_numbers = #tpu.dot_dimension_numbers<[1], [0], [0], [1], [0, 0, 1, 1], [], []>} : vector<24x160xbf16>, vector<160x32xbf16>, vector<24x32xf32> -> vector<24x32xf32>
    %8 = vector.broadcast %5 : vector<1x32xf32> to vector<24x32xf32>
    %9 = arith.addf %7, %8 : vector<24x32xf32>
    %cst_8 = arith.constant 0.000000e+00 : f32
    %10 = vector.broadcast %cst_8 : f32 to vector<24x32xf32>
    %11 = arith.maximumf %9, %10 : vector<24x32xf32>
    %c0_9 = arith.constant 0 : index
    %c0_10 = arith.constant 0 : index
    %c0_11 = arith.constant 0 : index
    %12 = vector.load %arg4[%c0_9, %c0_10, %c0_11] : memref<1x32x32xbf16, #tpu.memory_space<vmem>>, vector<1x32x32xbf16>
    %13 = vector.shape_cast %12 : vector<1x32x32xbf16> to vector<32x32xbf16>
    %c0_12 = arith.constant 0 : index
    %c0_13 = arith.constant 0 : index
    %c0_14 = arith.constant 0 : index
    %14 = vector.load %arg5[%c0_12, %c0_13, %c0_14] : memref<1x1x32xf32, #tpu.memory_space<vmem>>, vector<1x1x32xf32>
    %15 = vector.shape_cast %14 : vector<1x1x32xf32> to vector<1x32xf32>
    %16 = arith.truncf %11 : vector<24x32xf32> to vector<24x32xbf16>
    %cst_15 = arith.constant dense<0.000000e+00> : vector<24x32xf32>
    %17 = tpu.matmul %16, %13, %cst_15 {dimension_numbers = #tpu.dot_dimension_numbers<[1], [0], [0], [1], [0, 0, 1, 1], [], []>} : vector<24x32xbf16>, vector<32x32xbf16>, vector<24x32xf32> -> vector<24x32xf32>
    %18 = vector.broadcast %15 : vector<1x32xf32> to vector<24x32xf32>
    %19 = arith.addf %17, %18 : vector<24x32xf32>
    %cst_16 = arith.constant 0.000000e+00 : f32
    %20 = vector.broadcast %cst_16 : f32 to vector<24x32xf32>
    %21 = arith.maximumf %19, %20 : vector<24x32xf32>
    %c0_17 = arith.constant 0 : index
    %c0_18 = arith.constant 0 : index
    %c0_19 = arith.constant 0 : index
    %22 = vector.load %arg6[%c0_17, %c0_18, %c0_19] : memref<1x32x128xbf16, #tpu.memory_space<vmem>>, vector<1x32x128xbf16>
    %23 = vector.shape_cast %22 : vector<1x32x128xbf16> to vector<32x128xbf16>
    %c0_20 = arith.constant 0 : index
    %c0_21 = arith.constant 0 : index
    %c0_22 = arith.constant 0 : index
    %24 = vector.load %arg7[%c0_20, %c0_21, %c0_22] : memref<1x1x128xf32, #tpu.memory_space<vmem>>, vector<1x1x128xf32>
    %25 = vector.shape_cast %24 : vector<1x1x128xf32> to vector<1x128xf32>
    %26 = arith.truncf %21 : vector<24x32xf32> to vector<24x32xbf16>
    %cst_23 = arith.constant dense<0.000000e+00> : vector<24x128xf32>
    %27 = tpu.matmul %26, %23, %cst_23 {dimension_numbers = #tpu.dot_dimension_numbers<[1], [0], [0], [1], [0, 0, 1, 1], [], []>} : vector<24x32xbf16>, vector<32x128xbf16>, vector<24x128xf32> -> vector<24x128xf32>
    %28 = vector.broadcast %25 : vector<1x128xf32> to vector<24x128xf32>
    %29 = arith.addf %27, %28 : vector<24x128xf32>
    %c0_24 = arith.constant 0 : index
    %c0_25 = arith.constant 0 : index
    %c0_26 = arith.constant 0 : index
    %30 = vector.load %arg8[%c0_24, %c0_25, %c0_26] : memref<1x24x128xf32, #tpu.memory_space<vmem>>, vector<1x24x128xf32>
    %31 = vector.shape_cast %30 : vector<1x24x128xf32> to vector<24x128xf32>
    %32 = vector.shape_cast %29 : vector<24x128xf32> to vector<1x24x128xf32>
    tpu.vector_store %arg8[%c0_24, %c0_25, %c0_26], %32 {strides = array<i32>} : memref<1x24x128xf32, #tpu.memory_space<vmem>>, vector<1x24x128xf32>,
    return
  }
  func.func @transform_0(%arg0: i32) -> (i32, i32, i32) {
    %c0_i32 = arith.constant 0 : i32
    %c0_i32_0 = arith.constant 0 : i32
    %c0_i32_1 = arith.constant 0 : i32
    return %arg0, %c0_i32, %c0_i32_0 : i32, i32, i32
  }
  func.func @transform_1(%arg0: i32) -> (i32, i32, i32) {
    %c0_i32 = arith.constant 0 : i32
    %c0_i32_0 = arith.constant 0 : i32
    %c0_i32_1 = arith.constant 0 : i32
    return %arg0, %c0_i32, %c0_i32_0 : i32, i32, i32
  }
  func.func @transform_2(%arg0: i32) -> (i32, i32, i32) {
    %c0_i32 = arith.constant 0 : i32
    %c0_i32_0 = arith.constant 0 : i32
    %c0_i32_1 = arith.constant 0 : i32
    return %arg0, %c0_i32, %c0_i32_0 : i32, i32, i32
  }
  func.func @transform_3(%arg0: i32) -> (i32, i32, i32) {
    %c0_i32 = arith.constant 0 : i32
    %c0_i32_0 = arith.constant 0 : i32
    %c0_i32_1 = arith.constant 0 : i32
    return %arg0, %c0_i32, %c0_i32_0 : i32, i32, i32
  }
  func.func @transform_4(%arg0: i32) -> (i32, i32, i32) {
    %c0_i32 = arith.constant 0 : i32
    %c0_i32_0 = arith.constant 0 : i32
    %c0_i32_1 = arith.constant 0 : i32
    return %arg0, %c0_i32, %c0_i32_0 : i32, i32, i32
  }
  func.func @transform_5(%arg0: i32) -> (i32, i32, i32) {
    %c0_i32 = arith.constant 0 : i32
    %c0_i32_0 = arith.constant 0 : i32
    %c0_i32_1 = arith.constant 0 : i32
    return %arg0, %c0_i32, %c0_i32_0 : i32, i32, i32
  }
  func.func @transform_6(%arg0: i32) -> (i32, i32, i32) {
    %c0_i32 = arith.constant 0 : i32
    %c0_i32_0 = arith.constant 0 : i32
    %c0_i32_1 = arith.constant 0 : i32
    return %arg0, %c0_i32, %c0_i32_0 : i32, i32, i32
  }
  func.func @transform_7(%arg0: i32) -> (i32, i32, i32) {
    %c0_i32 = arith.constant 0 : i32
    %c0_i32_0 = arith.constant 0 : i32
    %c0_i32_1 = arith.constant 0 : i32
    return %arg0, %c0_i32, %c0_i32_0 : i32, i32, i32
  }
}

</mosaic_0001>

<bundles_post_ra>
// kernel: _lambda_.3
= control target key start
LH: loop header
LB: loop body
LE: loop exit
PB: predicated region body
PF: predicated region fallthrough
CT: control target
= control target key end

     0   :  { %vm50_vm0 = vcmask 261120   ;;  %s252_s1 = inlined_call_operand.vmem [shape: bf16[32,128], index: 1, kind: input, shape index: {}]   ;;  %s253_s0 = inlined_call_operand.vmem [shape: f32[64,32], index: 0, kind: input, shape index: {}]   ;;  %s254_s2 = inlined_call_operand.vmem [shape: f32[1,128], index: 2, kind: input, shape index: {}]   ;;  %s255_s3 = inlined_call_operand.vmem [shape: f32[64,128], index: 3, kind: output, shape index: {}]  }
   0x1   :  { %v169_v0 = vld [vmem:[%s252_s1] sm:$0xff]   ;;  %v170_v1 = vld [vmem:[%s252_s1 + $0x8] sm:$0xff]   ;;  %v17_v7 = vld [vmem:[%s253_s0 + $0x10] sm:$0xff] }
   0x2   :  { %153 = vmatprep.subr.bf16.mxu0 %v169_v0  ;;  %165 = vmatprep.subr.bf16.mxu1 %v169_v0  ;;  %v15_v2 = vld [vmem:[%s253_s0] sm:$0xff]  ;;  %v16_v3 = vld [vmem:[%s253_s0 + $0x8] sm:$0xff]  ;;  %v18_v8 = vld [vmem:[%s253_s0 + $0x18] sm:$0xff] }
   0x3   :  { %v19_v4 = vld [vmem:[%s253_s0 + $0x20] sm:$0xff]  ;;  %154 = vmatpush3.bf16.msra.mxu0 %v169_v0  ;;  %167 = vmatpush3.bf16.msra.mxu1 %v169_v0  ;;  %v28_v5 = vpack.c.bf16 %v16_v3, %v15_v2  ;;  %v20_v6 = vld [vmem:[%s253_s0 + $0x28] sm:$0xff]  ;;  %v21_v10 = vld [vmem:[%s253_s0 + $0x30] sm:$0xff]  ;;  %v29_v12 = vpack.c.bf16 %v18_v8, %v17_v7 }
   0x4   :  { %155 = vmatprep.subr.bf16.mxu0 %v170_v1  ;;  %166 = vmatprep.subr.bf16.mxu1 %v170_v1  ;;  %v30_v9 = vpack.c.bf16 %v20_v6, %v19_v4  ;;  %v22_v11 = vld [vmem:[%s253_s0 + $0x38] sm:$0xff]  ;;  %v140_v14 = vld [vmem:[%s254_s2] ss:$0 sm:$0xff] }
   0x5   :  { %157 = vmatprep.mubr.msk.bf16.mxu0 %vm50_vm0, %v28_v5  ;;  %v31_v13 = vpack.c.bf16 %v22_v11, %v21_v10 }
   0x6   :  { %161 = vmatprep.mubr.msk.bf16.mxu1 %vm50_vm0, %v30_v9 }
   0x7   :  { %156 = vmatpush3.bf16.msra.mxu0 %v170_v1  ;;  %168 = vmatpush3.bf16.msra.mxu1 %v170_v1 }
   0xa   :  { %158 = vmatmul.mubr.msk.bf16.vlgmr.msra.gmra.mrb[0].mxu0 %vm50_vm0, %v29_v12  ;;  %162 = vmatmul.mubr.msk.bf16.vlgmr.msra.gmra.mrb[0].mxu1 %vm50_vm0, %v31_v13 }
  0xdd   :  { %v159_v15 = vpop.f32.mrb[0].mxu0  ;;  %v163_v16 = vpop.f32.mrb[0].mxu1 }
  0xde   :  { %v106_v17 = vadd.f32 %v159_v15, %v140_v14  ;;  %v122_v18 = vadd.f32 %v163_v16, %v140_v14  ;;  %v97_v19 = vpop.f32.mrb[1].mxu0  ;;  %v113_v20 = vpop.f32.mrb[1].mxu1 }
  0xdf   :  { %v98_v21 = vadd.f32 %v140_v14, %v97_v19  ;;  %v114_v22 = vadd.f32 %v140_v14, %v113_v20  ;;  %v160_v23 = vpop.f32.mrb[2].mxu0  ;;  %v164_v24 = vpop.f32.mrb[2].mxu1 }
  0xe0   :  { %130 = vst [vmem:[%s255_s3 + $0x10] sm:$0xff] %v106_v17  ;;  %134 = vst [vmem:[%s255_s3 + $0x30] sm:$0xff] %v122_v18  ;;  %v109_v25 = vadd.f32 %v160_v23, %v140_v14  ;;  %v125_v26 = vadd.f32 %v164_v24, %v140_v14  ;;  %v100_v27 = vpop.f32.mrb[3].mxu0  ;;  %v116_v28 = vpop.f32.mrb[3].mxu1 }
  0xe1   :  { %128 = vst [vmem:[%s255_s3] sm:$0xff] %v98_v21  ;;  %132 = vst [vmem:[%s255_s3 + $0x20] sm:$0xff] %v114_v22  ;;  %v101_v29 = vadd.f32 %v140_v14, %v100_v27  ;;  %v117_v30 = vadd.f32 %v140_v14, %v116_v28 }
  0xe2   :  { %131 = vst [vmem:[%s255_s3 + $0x18] sm:$0xff] %v109_v25  ;;  %135 = vst [vmem:[%s255_s3 + $0x38] sm:$0xff] %v125_v26 }
  0xe3   :  { %129 = vst [vmem:[%s255_s3 + $0x8] sm:$0xff] %v101_v29  ;;  %133 = vst [vmem:[%s255_s3 + $0x28] sm:$0xff] %v117_v30 }

// kernel: neg.11
= control target key start
LH: loop header
LB: loop body
LE: loop exit
PB: predicated region body
PF: predicated region fallthrough
CT: control target
= control target key end

     0   :  { %s24_s0 = inlined_call_operand.vmem [shape: f32[12], index: 0, kind: input, shape index: {}]   ;;  %s25_s1 = inlined_call_operand.vmem [shape: f32[12], index: 1, kind: output, shape index: {}]  }
   0x1   :  { %v2_v0 = vld [vmem:[%s24_s0] sm:$0x1] }
   0x2   :  { %v5_v1 = vxor.u32 2147483648, %v2_v0 }
   0x4   :  { %7 = vst [vmem:[%s25_s1] sm:$0x1] %v5_v1 }

// kernel: neg.9
= control target key start
LH: loop header
LB: loop body
LE: loop exit
PB: predicated region body
PF: predicated region fallthrough
CT: control target
= control target key end

     0   :  { %s24_s0 = inlined_call_operand.vmem [shape: f32[24], index: 0, kind: input, shape index: {}]   ;;  %s25_s1 = inlined_call_operand.vmem [shape: f32[24], index: 1, kind: output, shape index: {}]  }
   0x1   :  { %v2_v0 = vld [vmem:[%s24_s0] sm:$0x1] }
   0x2   :  { %v5_v1 = vxor.u32 2147483648, %v2_v0 }
   0x4   :  { %7 = vst [vmem:[%s25_s1] sm:$0x1] %v5_v1 }

// kernel: _lambda_.5
= control target key start
LH: loop header
LB: loop body
LE: loop exit
PB: predicated region body
PF: predicated region fallthrough
CT: control target
= control target key end

     0   :  { %s957_s24 = smov 0   ;;  %s1027_s0 = inlined_call_operand.vmem [shape: f32[3,24,160], index: 0, kind: input, shape index: {}]   ;;  %s1028_s1 = inlined_call_operand.vmem [shape: bf16[3,160,32], index: 1, kind: input, shape index: {}]   ;;  %s1029_s2 = inlined_call_operand.vmem [shape: f32[3,1,32], index: 2, kind: input, shape index: {}]   ;;  %s1030_s3 = inlined_call_operand.vmem [shape: bf16[3,32,32], index: 3, kind: input, shape index: {}]   ;;  %s1031_s4 = inlined_call_operand.vmem [shape: f32[3,1,32], index: 4, kind: input, shape index: {}]   ;;  %s1032_s5 = inlined_call_operand.vmem [shape: bf16[3,32,128], index: 5, kind: input, shape index: {}]   ;;  %s1033_s6 = inlined_call_operand.vmem [shape: f32[3,1,128], index: 6, kind: input, shape index: {}]   ;;  %s1034_s7 = inlined_call_operand.vmem [shape: f32[3,24,128], index: 7, kind: output, shape index: {}]  }
   0x1 LB: > { %s819_s25 = sadd.s32 4294967295, %s914_s24   ;;  %p823_p0 = scmp.ge.s32.totalorder %s914_s24, 1  ;;  %s914_s24 = sphi %s957_s24, %s17_s24  }
   0x2   : > { %p291_p1 = scmp.lt.s32.totalorder %s914_s24, 4 }
   0x4   : > { %p292_p2 = pnand %p823_p0, %p291_p1 }
   0x5   : > { %p347_p3 = scmp.lt.s32.totalorder (!%p292_p2), %s819_s25, 2  ;;  %v916_v0 = vmov (!%p292_p2), 0   ;;  %vm479_vm0 = vcmask (!%p292_p2), 261120  }
   0x6   : > { %295 = sbr.rel (%p292_p2) target bundleno = 723 (0x2d3), region = 48  ;;  %486 = vmatprep.subr.bf16.mxu0 (!%p292_p2), %v916_v0 }
   0xd   : > { %s1036_s25 = smov (!%p347_p3, %s819_s25), 2 }
   0xe   : > { %s883_s26 = smul.u32 80, %s1036_s25  ;;  %s856_s11 = sshll.u32 %s1036_s25, 4 }
   0xf   : > { %s882_s30 = smul.u32 48, %s1036_s25  ;;  %s364_s14 = scalar_lea.vmem %s1030_s3, %s856_s11 }
  0x10   : > { %s971_s29 = scalar_lea.vmem %s1028_s1, %s883_s26  ;;  %s372_s17 = scalar_lea.vmem %s1032_s5, %s856_s11  ;;  %v904_v21 = vld [vmem:[%s364_s14] sm:$0xff]   ;;  %v905_v22 = vld [vmem:[%s364_s14 + $0x8] sm:$0xff]  }
  0x11   : > { %v894_v1 = vld [vmem:[%s971_s29] sm:$0xff]   ;;  %v895_v2 = vld [vmem:[%s971_s29 + $0x8] sm:$0xff]   ;;  %v896_v3 = vld [vmem:[%s971_s29 + $0x10] sm:$0xff]   ;;  %s980_s10 = scalar_lea.vmem %s1027_s0, %s882_s30  ;;  %866 = vmatprep.subr.bf16.mxu1 %v904_v21  ;;  %s359_s20 = scalar_lea.vmem %s1029_s2, %s1036_s25 }
  0x12   : > { %487 = vmatpush1.bf16.msra.mxu0 %v894_v1  ;;  %v897_v4 = vld [vmem:[%s971_s29 + $0x18] sm:$0xff]   ;;  %v383_v5 = vld [vmem:[%s980_s10 + $0x8] sm:$0xff]  ;;  %v898_v8 = vld [vmem:[%s971_s29 + $0x20] sm:$0xff]   ;;  %867 = vmatpush3.bf16.msra.mxu1 %v904_v21  ;;  %s367_s23 = scalar_lea.vmem %s1031_s4, %s1036_s25  ;;  %s375_s28 = scalar_lea.vmem %s1033_s6, %s1036_s25 }
  0x13   : > { %488 = vmatprep.subr.bf16.mxu0 %v916_v0  ;;  %v385_v6 = vld [vmem:[%s980_s10 + $0x18] sm:$0xff]  ;;  %v899_v9 = vld [vmem:[%s971_s29 + $0x28] sm:$0xff]   ;;  %v900_v10 = vld [vmem:[%s971_s29 + $0x30] sm:$0xff]   ;;  %868 = vmatprep.subr.bf16.mxu1 %v905_v22 }
  0x14   : > { %v410_v7 = vpack.c.bf16 %v385_v6, %v383_v5  ;;  %v901_v11 = vld [vmem:[%s971_s29 + $0x38] sm:$0xff]   ;;  %v902_v12 = vld [vmem:[%s971_s29 + $0x40] sm:$0xff]   ;;  %v903_v13 = vld [vmem:[%s971_s29 + $0x48] sm:$0xff]   ;;  %s884_s29 = smul.u32 24, %s1036_s25 }
  0x15   : > { %v382_v14 = vld [vmem:[%s980_s10] sm:$0xff]  ;;  %v384_v15 = vld [vmem:[%s980_s10 + $0x10] sm:$0xff]  ;;  %v387_v16 = vld [vmem:[%s980_s10 + $0x28] sm:$0xff] }
  0x16   : > { %489 = vmatpush1.bf16.msra.mxu0 %v895_v2  ;;  %842 = vmatprep.mubr.msk.bf16.mxu0 %vm479_vm0, %v410_v7  ;;  %v409_v17 = vpack.c.bf16 %v384_v15, %v382_v14  ;;  %v412_v18 = vpack.c.bf16 %v387_v16, %v387_v16  ;;  %v386_v19 = vld [vmem:[%s980_s10 + $0x20] sm:$0xff]  ;;  %v907_v41 = vld [vmem:[%s372_s17 + $0x8] sm:$0xff]   ;;  %s380_s9 = scalar_lea.vmem %s1034_s7, %s884_s29 }
  0x17   : > { %490 = vmatprep.subr.bf16.mxu0 %v916_v0  ;;  %v411_v20 = vpack.c.bf16 %v386_v19, %v386_v19  ;;  %869 = vmatpush3.bf16.msra.mxu1 %v905_v22  ;;  %v831_v23 = vld [vmem:[%s359_s20] ss:$0 sm:$0xff] }
  0x18   : > { %v906_v40 = vld [vmem:[%s372_s17] sm:$0xff]  }
  0x19   : > { %874 = vmatprep.subr.bf16.mxu1 %v906_v40  ;;  %v844_v42 = vld [vmem:[%s367_s23] ss:$0 sm:$0xff] }
  0x1a   : > { %491 = vmatpush1.bf16.msra.mxu0 %v896_v3  ;;  %v849_v55 = vld [vmem:[%s375_s28] ss:$0 sm:$0xff] }
  0x1b   : > { %492 = vmatprep.subr.bf16.mxu0 %v916_v0 }
  0x1e   : > { %493 = vmatpush1.bf16.msra.mxu0 %v897_v4 }
  0x1f   : > { %494 = vmatprep.subr.bf16.mxu0 %v916_v0 }
  0x22   : > { %495 = vmatpush1.bf16.msra.mxu0 %v898_v8 }
  0x23   : > { %496 = vmatprep.subr.bf16.mxu0 %v916_v0 }
  0x26   : > { %497 = vmatpush1.bf16.msra.mxu0 %v899_v9 }
  0x27   : > { %498 = vmatprep.subr.bf16.mxu0 %v916_v0 }
  0x2a   : > { %499 = vmatpush1.bf16.msra.mxu0 %v900_v10 }
  0x2b   : > { %500 = vmatprep.subr.bf16.mxu0 %v916_v0 }
  0x2e   : > { %501 = vmatpush1.bf16.msra.mxu0 %v901_v11 }
  0x2f   : > { %502 = vmatprep.subr.bf16.mxu0 %v916_v0 }
  0x32   : > { %503 = vmatpush1.bf16.msra.mxu0 %v902_v12 }
  0x33   : > { %504 = vmatprep.subr.bf16.mxu0 %v916_v0 }
  0x36   : > { %505 = vmatpush1.bf16.msra.mxu0 %v903_v13 }
  0x39   : > { %519 = vmatmul.mubr.bf16.vlgmr.msra.gmra.mrb[0].mxu0 %v409_v17 }
  0x3a   : > { %843 = vmatprep.mubr.msk.bf16.mxu0 %vm479_vm0, %v412_v18 }
  0x41   : > { %527 = vmatmul.mubr.bf16.gmra.mrb[4].mxu0 %v411_v20 }
 0x10c   : > { %v520_v24 = vpop.f32.mrb[0].mxu0 }
 0x10d   : > { %v521_v25 = vadd.f32 %v831_v23, %v520_v24  ;;  %v522_v26 = vpop.f32.mrb[1].mxu0 }
 0x10e   : > { %v523_v27 = vpop.f32.mrb[2].mxu0 }
 0x10f   : > { %v524_v28 = vadd.f32 %v831_v23, %v523_v27  ;;  %v525_v29 = vpop.f32.mrb[3].mxu0  ;;  %v534_v30 = vmax.f32 %v521_v25, 0.0 }
 0x111   : > { %v535_v31 = vmax.f32 %v524_v28, 0.0 }
 0x113   : > { %v542_v32 = vpack.c.bf16 %v535_v31, %v534_v30 }
 0x114   : > { %v528_v33 = vpop.f32.mrb[4].mxu0 }
 0x115   : > { %v529_v34 = vadd.f32 %v831_v23, %v528_v33  ;;  %v530_v35 = vpop.f32.mrb[5].mxu0  ;;  %870 = vmatprep.mubr.msk.bf16.mxu1 %vm479_vm0, %v542_v32 }
 0x116   : > { %v531_v36 = vpop.f32.mrb[6].mxu0 }
 0x117   : > { %v536_v37 = vmax.f32 %v529_v34, 0.0  ;;  %v532_v38 = vpop.f32.mrb[7].mxu0 }
 0x119   : > { %v543_v39 = vpack.c.bf16 %v536_v37, %v536_v37 }
 0x11b   : > { %871 = vmatmul.mubr.msk.bf16.vlgmr.msra.gmra.mrb[0].mxu1 %vm479_vm0, %v543_v39 }
 0x11c   : > { %875 = vmatpush3.bf16.msra.mxu1 %v906_v40 }
 0x11d   : > { %876 = vmatprep.subr.bf16.mxu1 %v907_v41 }
 0x120   : > { %877 = vmatpush3.bf16.msra.mxu1 %v907_v41 }
 0x1ee   : > { %v872_v43 = vpop.f32.mrb[0].mxu1 }
 0x1ef   : > { %v611_v44 = vadd.f32 %v872_v43, %v844_v42  ;;  %v602_v45 = vpop.f32.mrb[1].mxu1 }
 0x1f0   : > { %v603_v46 = vadd.f32 %v844_v42, %v602_v45  ;;  %v873_v47 = vpop.f32.mrb[2].mxu1 }
 0x1f1   : > { %v605_v48 = vpop.f32.mrb[3].mxu1  ;;  %v618_v50 = vmax.f32 %v611_v44, 0.0 }
 0x1f2   : > { %v606_v49 = vadd.f32 %v844_v42, %v605_v48  ;;  %v616_v51 = vmax.f32 %v603_v46, 0.0 }
 0x1f3   : > { %v625_v54 = vpack.c.bf16 %v618_v50, %v618_v50 }
 0x1f4   : > { %v617_v52 = vmax.f32 %v606_v49, 0.0 }
 0x1f6   : > { %v624_v53 = vpack.c.bf16 %v617_v52, %v616_v51 }
 0x1f8   : > { %878 = vmatprep.mubr.msk.bf16.mxu1 %vm479_vm0, %v624_v53 }
 0x1f9   : > { %879 = vmatmul.mubr.msk.bf16.vlgmr.msra.gmra.mrb[4].mxu1 %vm479_vm0, %v625_v54 }
 0x2cc   : > { %v880_v56 = vpop.f32.mrb[4].mxu1 }
 0x2cd   : > { %v693_v57 = vadd.f32 %v880_v56, %v849_v55  ;;  %v684_v58 = vpop.f32.mrb[5].mxu1 }
 0x2ce   : > { %v685_v59 = vadd.f32 %v849_v55, %v684_v58  ;;  %v881_v60 = vpop.f32.mrb[6].mxu1 }
 0x2cf   : > { %700 = vst [vmem:[%s380_s9 + $0x10] sm:$0xff] %v693_v57  ;;  %v687_v61 = vpop.f32.mrb[7].mxu1 }
 0x2d0   : > { %698 = vst [vmem:[%s380_s9] sm:$0xff] %v685_v59  ;;  %v688_v62 = vadd.f32 %v849_v55, %v687_v61 }
 0x2d2   : > { %699 = vst [vmem:[%s380_s9 + $0x8] sm:$0xff] %v688_v62 }
 0x2d3 PF: > { %s17_s24 = sadd.s32 1, %s914_s24  }
 0x2d4   : > { %p14_p4 = scmp.ge.s32.totalorder %s17_s24, 5  }
 0x2d6   :  { %16 = sbr.rel (!%p14_p4) target bundleno = 1 (0x1), region = 96 }

// kernel: _lambda_.4
= control target key start
LH: loop header
LB: loop body
LE: loop exit
PB: predicated region body
PF: predicated region fallthrough
CT: control target
= control target key end

     0   :  { %s2870_s21 = smov 0   ;;  %s3280_s0 = inlined_call_operand.vmem [shape: f32[32,32], index: 0, kind: input, shape index: {}]   ;;  %s3281_s1 = inlined_call_operand.vmem [shape: f32[4,32,32], index: 1, kind: input, shape index: {}]   ;;  %s3282_s2 = inlined_call_operand.vmem [shape: bf16[32,32], index: 2, kind: input, shape index: {}]   ;;  %s3283_s3 = inlined_call_operand.vmem [shape: f32[1,32], index: 3, kind: input, shape index: {}]   ;;  %s3284_s4 = inlined_call_operand.vmem [shape: bf16[2,32,96], index: 4, kind: input, shape index: {}]   ;;  %s3285_s5 = inlined_call_operand.vmem [shape: f32[2,1,96], index: 5, kind: input, shape index: {}]   ;;  %s3286_s6 = inlined_call_operand.vmem [shape: bf16[2,32,32], index: 6, kind: input, shape index: {}]   ;;  %s3287_s7 = inlined_call_operand.vmem [shape: f32[2,1,32], index: 7, kind: input, shape index: {}]   ;;  %s3288_s8 = inlined_call_operand.vmem [shape: f32[2,1,32], index: 8, kind: input, shape index: {}]   ;;  %s3289_s9 = inlined_call_operand.vmem [shape: f32[2,1,32], index: 9, kind: input, shape index: {}]   ;;  %s3290_s10 = inlined_call_operand.vmem [shape: bf16[2,32,64], index: 10, kind: input, shape index: {}]   ;;  %s3291_s11 = inlined_call_operand.vmem [shape: f32[2,1,64], index: 11, kind: input, shape index: {}]   ;;  %s3292_s12 = inlined_call_operand.vmem [shape: bf16[2,64,32], index: 12, kind: input, shape index: {}]   ;;  %s3293_s13 = inlined_call_operand.vmem [shape: f32[2,1,32], index: 13, kind: input, shape index: {}]   ;;  %s3294_s14 = inlined_call_operand.vmem [shape: f32[2,1,32], index: 14, kind: input, shape index: {}]   ;;  %s3295_s15 = inlined_call_operand.vmem [shape: f32[2,1,32], index: 15, kind: input, shape index: {}]   ;;  %s3296_s16 = inlined_call_operand.vmem [shape: f32[32,32], index: 16, kind: output, shape index: {}]  }
   0x1   :  { %3302 = sst [smem:[#allocation5_spill]] %s3280_s0 }
   0x2   :  { %3303 = sst [smem:[#allocation6_spill]] %s3281_s1 }
   0x3   :  { %3304 = sst [smem:[#allocation7_spill]] %s3283_s3 }
   0x4   :  { %3305 = sst [smem:[#allocation8_spill]] %s3284_s4 }
   0x5   :  { %3306 = sst [smem:[#allocation9_spill]] %s3286_s6 }
   0x6   :  { %3307 = sst [smem:[#allocation10_spill]] %s3296_s16 }
   0x7 LB: > { %3308 = sst [smem:[#allocation3_spill]] %s2772_s21  ;;  %s2876_s22 = sadd.s32 4294967295, %s2772_s21   ;;  %s2772_s21 = sphi %s2870_s21, %s26_s21  }
   0x8   : > { %p2367_p0 = scmp.ge.s32.totalorder %s2772_s21, 1  ;;  %p551_p1 = scmp.lt.s32.totalorder %s2772_s21, 3 }
   0xa   : > { %p552_p2 = pnand %p2367_p0, %p551_p1 }
   0xc   : > { %555 = sbr.rel (%p552_p2) target bundleno = 3781 (0xec5), region = 84 }
  0x13   : > { %p635_p3 = scmp.lt.s32.totalorder %s2876_s22, 1  ;;  %s3309_s4 = sld [smem:[#allocation8_spill]] }
  0x14   : > { %s3310_s6 = sld [smem:[#allocation9_spill]]  ;;  %p2376_p4 = scmp.ne.s32.totalorder %s2876_s22, 0 }
  0x15   : > { %s2882_s23 = scalar_select %p635_p3, %s2876_s22, 1 }
  0x16   : > { %683 = sbr.rel (%p2376_p4) target bundleno = 250 (0xfa), region = 88  ;;  %v2676_v0 = vld [vmem:[%s3282_s2] sm:$0xff] (!%p2376_p4)   ;;  %v2677_v1 = vld [vmem:[%s3282_s2 + $0x8] sm:$0xff] (!%p2376_p4)   ;;  %s3312_s27 = sld [smem:[#allocation5_spill]] (!%p2376_p4)  ;;  %vm713_vm0 = vcmask (!%p2376_p4), 261120  }
  0x17   : > { %s2443_s24 = sshll.u32 %s2882_s23, 4  ;;  %s672_s25 = scalar_lea.vmem %s3293_s13, %s2882_s23  ;;  %2509 = vmatprep.subr.bf16.mxu0 (!%p2376_p4), %v2676_v0 }
  0x18   : > { %s675_s28 = scalar_lea.vmem %s3294_s14, %s2882_s23  ;;  %s678_s3 = scalar_lea.vmem %s3295_s15, %s2882_s23  ;;  %2510 = vmatpush3.bf16.msra.mxu0 (!%p2376_p4), %v2676_v0 }
  0x19   : > { %s2892_s30 = scalar_lea.vmem %s3309_s4, %s2443_s24  ;;  %s2914_s4 = scalar_lea.vmem %s3290_s10, %s2443_s24  ;;  %2511 = vmatprep.subr.bf16.mxu0 (!%p2376_p4), %v2677_v1 }
  0x1a   : > { %s2897_s18 = scalar_lea.vmem %s3310_s6, %s2443_s24  ;;  %s664_s6 = scalar_lea.vmem %s3291_s11, %s2882_s23 }
  0x1b   : > { %3311 = sst [smem:[#allocation4_spill]] %s2897_s18  ;;  %s2446_s18 = sshll.u32 %s2882_s23, 5 }
  0x1c   : > { %s2924_s21 = scalar_lea.vmem %s3292_s12, %s2446_s18  ;;  %v684_v2 = vld [vmem:[%s3312_s27] sm:$0xff] (!%p2376_p4)  ;;  %v685_v3 = vld [vmem:[%s3312_s27 + $0x8] sm:$0xff] (!%p2376_p4)  ;;  %v686_v5 = vld [vmem:[%s3312_s27 + $0x10] sm:$0xff] (!%p2376_p4)  ;;  %2512 = vmatpush3.bf16.msra.mxu0 (!%p2376_p4), %v2677_v1  ;;  %s3313_s20 = sld [smem:[#allocation7_spill]] (!%p2376_p4) }
  0x1d   : > { %v693_v4 = vpack.c.bf16 %v685_v3, %v684_v2  ;;  %v687_v6 = vld [vmem:[%s3312_s27 + $0x18] sm:$0xff] }
  0x1e   : > { %v694_v7 = vpack.c.bf16 %v687_v6, %v686_v5 }
  0x1f   : > { %2513 = vmatprep.mubr.msk.bf16.mxu0 %vm713_vm0, %v693_v4 }
  0x20   : > { %2514 = vmatmul.mubr.msk.bf16.vlgmr.msra.gmra.mrb[0].mxu0 %vm713_vm0, %v694_v7 }
  0x22   : > { %v2377_v8 = vld [vmem:[%s3313_s20] ss:$0 sm:$0xff] }
  0xf3   : > { %v2515_v9 = vpop.f32.mrb[0].mxu0 }
  0xf4   : > { %v763_v10 = vadd.f32 %v2515_v9, %v2377_v8  ;;  %v754_v11 = vpop.f32.mrb[1].mxu0 }
  0xf5   : > { %v755_v12 = vadd.f32 %v2377_v8, %v754_v11  ;;  %v2516_v13 = vpop.f32.mrb[2].mxu0 }
  0xf6   : > { %771 = vst.msk [vmem:[#allocation2 + $0x10] sm:$0xff] %vm713_vm0, %v763_v10  ;;  %v766_v14 = vadd.f32 %v2516_v13, %v2377_v8  ;;  %v757_v15 = vpop.f32.mrb[3].mxu0 }
  0xf7   : > { %769 = vst.msk [vmem:[#allocation2] sm:$0xff] %vm713_vm0, %v755_v12  ;;  %v758_v16 = vadd.f32 %v2377_v8, %v757_v15 }
  0xf8   : > { %772 = vst.msk [vmem:[#allocation2 + $0x18] sm:$0xff] %vm713_vm0, %v766_v14 }
  0xf9   : > { %770 = vst.msk [vmem:[#allocation2 + $0x8] sm:$0xff] %vm713_vm0, %v758_v16 }
  0xfa PF: > { %v2678_v17 = vld [vmem:[%s2892_s30] sm:$0xff]   ;;  %v2679_v18 = vld [vmem:[%s2892_s30 + $0x8] sm:$0xff]   ;;  %vm802_vm1 = vcmask 261120   ;;  %s3314_s16 = scalar_lea.vmem %s3285_s5, %s2882_s23  ;;  %vm870_vm2 = vcmask 64512   ;;  %s2774_s26 = smov 96   ;;  %vm1250_vm3 = vcmask 1043456  }
  0xfb   : > { %2517 = vmatprep.subr.bf16.mxu1 %v2678_v17  ;;  %v2382_v26 = vld [vmem:[%s3314_s16] ss:$0 sm:$0xff]  ;;  %s3315_s0 = sld [smem:[#allocation6_spill]]  ;;  %s2775_s16 = smov 64   ;;  %vm2082_vm4 = vcmask 523264  }
  0xfc   : > { %2518 = vmatpush3.bf16.msra.mxu1 %v2678_v17  ;;  %s2777_s24 = smov 112   ;;  %s2778_s29 = smov 88  }
  0xfd   : > { %v2972_v21 = vld [vmem:[#allocation2 + $0x10] sm:$0xff]  ;;  %2519 = vmatprep.subr.bf16.mxu1 %v2679_v18  ;;  %s2779_s17 = smov 120   ;;  %s2782_s18 = smov 104  }
  0xfe   : > { %v2968_v19 = vld [vmem:[#allocation2] sm:$0xff]  ;;  %s3317_s20 = scalar_lea.vmem %s3287_s7, %s2882_s23  ;;  %s3318_s1 = scalar_lea.vmem %s3288_s8, %s2882_s23 }
  0xff   : > { %v2976_v23 = vld [vmem:[#allocation2 + $0x18] sm:$0xff]  ;;  %p2440_p5 = scmp.ne.s32.totalorder %s2876_s22, 1 }
 0x100   : > { %v2970_v20 = vld [vmem:[#allocation2 + $0x8] sm:$0xff]  ;;  %v783_v24 = vpack.c.bf16 %v2976_v23, %v2972_v21  ;;  %2520 = vmatpush3.bf16.msra.mxu1 %v2679_v18 }
 0x101   : > { %v782_v22 = vpack.c.bf16 %v2970_v20, %v2968_v19  ;;  %v938_v41 = vld [vmem:[%s3315_s0 + $0x10] sm:$0xff]  ;;  %v936_v44 = vld [vmem:[%s3315_s0] sm:$0xff]  ;;  %v937_v49 = vld [vmem:[%s3315_s0 + $0x8] sm:$0xff] }
 0x102   : > { %v939_v56 = vld [vmem:[%s3315_s0 + $0x18] sm:$0xff] }
 0x103   : > { %2521 = vmatprep.mubr.msk.bf16.mxu1 %vm802_vm1, %v782_v22 }
 0x104   : > { %2522 = vmatmul.mubr.msk.bf16.vlgmr.msra.gmra.mrb[0].mxu1 %vm802_vm1, %v783_v24 }
 0x1d7   : > { %v2523_v25 = vpop.f32.mrb[0].mxu1 }
 0x1d8   : > { %v843_v27 = vpop.f32.mrb[1].mxu1  ;;  %v852_v29 = vadd.f32 %v2523_v25, %v2382_v26 }
 0x1d9   : > { %v2524_v28 = vpop.f32.mrb[2].mxu1  ;;  %v844_v32 = vadd.f32 %v2382_v26, %v843_v27 }
 0x1da   : > { %v855_v30 = vadd.f32 %v2524_v28, %v2382_v26  ;;  %v846_v31 = vpop.f32.mrb[3].mxu1 }
 0x1db   : > { %v847_v33 = vadd.f32 %v2382_v26, %v846_v31 }
 0x1dc   : > { %v2987_v34 = vpack.c.bf16 %v855_v30, %v852_v29 }
 0x1dd   : > { %v2989_v35 = vpack.c.bf16 %v847_v33, %v844_v32 }
 0x1df   : > { %866 = vrot.lane.b32.xlu0 %v2989_v35, %s2774_s26  ;;  %2529 = vmatprep.mubr.msk.bf16.mxu1 %vm870_vm2, %v2989_v35 }
 0x1e3   : > { %868 = vrot.lane.b32.xlu0 %v2987_v34, %s2774_s26  ;;  %s2776_s26 = smov 80  }
 0x251   : > { %v867_v36 = vpop.permute.xlu0 %866 }
 0x252   : > { %v878_v37 = vsel %vm870_vm2, %v867_v36, 0  ;;  %2645 = vmatprep.subr.msk.bf16.mxu1 %vm870_vm2, %v867_v36 }
 0x253   : > { %2526 = vmatpush3.bf16.xpose.msra.mxu1 %v878_v37 }
 0x255   : > { %v869_v38 = vpop.permute.xlu0 %868 }
 0x256   : > { %2646 = vmatprep.subr.msk.bf16.mxu1 %vm870_vm2, %v869_v38  ;;  %v881_v39 = vsel %vm870_vm2, %v869_v38, 0 }
 0x25b   : > { %2528 = vmatpush3.bf16.xpose.msra.mxu1 %v881_v39 }
 0x262   : > { %2530 = vmatmul.mubr.msk.bf16.vlgmr.msra.gmra.mrb[4].mxu1 %vm870_vm2, %v2987_v34 }
 0x335   : > { %v2531_v40 = vpop.f32.mrb[4].mxu1 }
 0x336   : > { %v934_v42 = vmul.f32 0.35355338, %v2531_v40  ;;  %v917_v43 = vpop.f32.mrb[5].mxu1 }
 0x337   : > { %v932_v45 = vmul.f32 0.35355338, %v917_v43  ;;  %v2532_v46 = vpop.f32.mrb[6].mxu1 }
 0x338   : > { %v920_v47 = vpop.f32.mrb[7].mxu1  ;;  %v942_v48 = vadd.f32 %v938_v41, %v934_v42  ;;  %v935_v53 = vmul.f32 0.35355338, %v2532_v46 }
 0x339   : > { %v933_v50 = vmul.f32 0.35355338, %v920_v47  ;;  %v940_v51 = vadd.f32 %v936_v44, %v932_v45 }
 0x33a   : > { %v950_v52 = vsel %vm802_vm1, %v942_v48, -inf  ;;  %v943_v58 = vadd.f32 %v939_v56, %v935_v53 }
 0x33b   : > { %951 = vmax.xlane.f32.xlu0 %v950_v52  ;;  %v944_v54 = vsel %vm802_vm1, %v940_v51, -inf  ;;  %v941_v55 = vadd.f32 %v937_v49, %v933_v50 }
 0x33c   : > { %945 = vmax.xlane.f32.xlu1 %v944_v54  ;;  %v953_v59 = vsel %vm802_vm1, %v943_v58, -inf }
 0x33d   : > { %v947_v57 = vsel %vm802_vm1, %v941_v55, -inf }
 0x340   : > { %948 = vmax.xlane.f32.xlu1 %v947_v57 }
 0x344   : > { %954 = vmax.xlane.f32.xlu1 %v953_v59 }
 0x351   : > { %992 = vrot.lane.b32.xlu0 %v2987_v34, %s2775_s16 }
 0x355   : > { %1365 = vrot.lane.b32.xlu0 %v2989_v35, %s2776_s26  ;;  %990 = vrot.lane.b32.xlu1 %v2989_v35, %s2775_s16 }
 0x359   : > { %1361 = vrot.lane.b32.xlu0 %v2989_v35, %s2777_s24 }
 0x3c8   : > { %v952_v60 = vpop.xlane.xlu0 %951 }
 0x3c9   : > { %v958_v61 = vsub.f32 %v942_v48, %v952_v60  ;;  %v946_v62 = vpop.xlane.xlu1 %945 }
 0x3ca   : > { %v956_v63 = vsub.f32 %v940_v51, %v946_v62 }
 0x3cb   : > { %v964_v0 = vmul.f32 1.442695, %v958_v61 }
 0x3cc   : > { %v960_v1 = vmul.f32 1.442695, %v956_v63  ;;  %v993_v10 = vpop.permute.xlu0 %992  ;;  %v2394_v63 = vld [vmem:[%s3315_s0 + $0x28] sm:$0xff] }
 0x3cd   : > { %2686 = vpow2.f32 %v964_v0  ;;  %v949_v2 = vpop.xlane.xlu1 %948  ;;  %v2395_v0 = vld [vmem:[%s3315_s0 + $0x30] sm:$0xff] }
 0x3ce   : > { %2688 = vpow2.f32 %v960_v1  ;;  %v957_v3 = vsub.f32 %v941_v55, %v949_v2 }
 0x3d0   : > { %v962_v6 = vmul.f32 1.442695, %v957_v3  ;;  %v1366_v43 = vpop.permute.xlu0 %1365 }
 0x3d1   : > { %v955_v4 = vpop.xlane.xlu1 %954  ;;  %v1376_v45 = vsel %vm870_vm2, %v1366_v43, 0 }
 0x3d2   : > { %v959_v5 = vsub.f32 %v943_v58, %v955_v4  ;;  %v2393_v58 = vld [vmem:[%s3315_s0 + $0x20] sm:$0xff] }
 0x3d4   : > { %v966_v7 = vmul.f32 1.442695, %v959_v5  ;;  %v1362_v46 = vpop.permute.xlu0 %1361 }
 0x3d5   : > { %v991_v8 = vpop.permute.xlu1 %990 }
 0x3d6   : > { %2690 = vpow2.f32 %v966_v7  ;;  %2533 = vmatprep.subr.bf16.mxu0 %v991_v8  ;;  %v2396_v7 = vld [vmem:[%s3315_s0 + $0x38] sm:$0xff] }
 0x3d7   : > { %v2687_v9 = vpop.eup %2686  ;;  %2534 = vmatpush3.bf16.msra.mxu0 %v991_v8  ;;  %2692 = vpow2.f32 %v962_v6 }
 0x3d8   : > { %2535 = vmatprep.subr.bf16.mxu0 %v993_v10  ;;  %v974_v11 = vsel %vm802_vm1, %v2687_v9, 0.0  ;;  %v2689_v12 = vpop.eup %2688 }
 0x3d9   : > { %975 = vadd.xlane.f32.xlu1 %v974_v11  ;;  %v968_v13 = vsel %vm802_vm1, %v2689_v12, 0.0 }
 0x3db   : > { %2536 = vmatpush3.bf16.msra.mxu0 %v993_v10 }
 0x3dd   : > { %969 = vadd.xlane.f32.xlu1 %v968_v13 }
 0x3e0   : > { %v2691_v14 = vpop.eup %2690 }
 0x3e1   : > { %v977_v15 = vsel %vm802_vm1, %v2691_v14, 0.0  ;;  %v2693_v16 = vpop.eup %2692 }
 0x3e2   : > { %978 = vadd.xlane.f32.xlu1 %v977_v15  ;;  %v971_v17 = vsel %vm802_vm1, %v2693_v16, 0.0 }
 0x3e6   : > { %972 = vadd.xlane.f32.xlu1 %v971_v17 }
 0x3f7   : > { %1057 = vrot.lane.b32.xlu1 %v2989_v35, %s2778_s29 }
 0x3fb   : > { %1059 = vrot.lane.b32.xlu1 %v2987_v34, %s2778_s29  ;;  %s2780_s29 = smov 56  }
 0x3ff   : > { %1053 = vrot.lane.b32.xlu1 %v2989_v35, %s2779_s17 }
 0x403   : > { %1055 = vrot.lane.b32.xlu1 %v2987_v34, %s2779_s17  ;;  %s2781_s17 = smov 72  }
 0x407   : > { %1367 = vrot.lane.b32.xlu1 %v2987_v34, %s2776_s26 }
 0x40b   : > { %1363 = vrot.lane.b32.xlu1 %v2987_v34, %s2777_s24  ;;  %s3319_s24 = scalar_lea.vmem %s3289_s9, %s2882_s23 }
 0x466   : > { %v976_v18 = vpop.xlane.xlu1 %975 }
 0x46a   : > { %v970_v22 = vpop.xlane.xlu1 %969 }
 0x46f   : > { %v979_v24 = vpop.xlane.xlu1 %978 }
 0x470   : > { %2694 = vrcp.f32 %v979_v24 }
 0x471   : > { %2696 = vrcp.f32 %v970_v22 }
 0x472   : > { %2698 = vrcp.f32 %v976_v18 }
 0x473   : > { %v973_v25 = vpop.xlane.xlu1 %972 }
 0x474   : > { %2700 = vrcp.f32 %v973_v25 }
 0x477   : > { %v1058_v26 = vpop.permute.xlu1 %1057 }
 0x478   : > { %2647 = vmatprep.subr.msk.bf16.mxu0 %vm870_vm2, %v1058_v26  ;;  %v1068_v40 = vsel %vm870_vm2, %v1058_v26, 0 }
 0x47a   : > { %v2695_v27 = vpop.eup %2694 }
 0x47b   : > { %v2697_v28 = vpop.eup %2696  ;;  %v1060_v31 = vpop.permute.xlu1 %1059  ;;  %v987_v32 = vmul.f32 %v2695_v27, %v2691_v14 }
 0x47c   : > { %v2699_v29 = vpop.eup %2698  ;;  %v984_v33 = vmul.f32 %v2697_v28, %v2689_v12  ;;  %v1071_v42 = vsel %vm870_vm2, %v1060_v31, 0 }
 0x47d   : > { %v986_v37 = vmul.f32 %v2699_v29, %v2687_v9 }
 0x47e   : > { %v2701_v30 = vpop.eup %2700 }
 0x47f   : > { %v985_v36 = vmul.f32 %v2701_v30, %v2693_v16  ;;  %v989_v39 = vpack.c.bf16 %v987_v32, %v986_v37  ;;  %v1054_v41 = vpop.permute.xlu1 %1053 }
 0x481   : > { %v988_v38 = vpack.c.bf16 %v985_v36, %v984_v33 }
 0x483   : > { %2537 = vmatprep.mubr.msk.bf16.mxu0 %vm802_vm1, %v988_v38  ;;  %v1056_v44 = vpop.permute.xlu1 %1055 }
 0x484   : > { %2538 = vmatmul.mubr.msk.bf16.vlgmr.msra.gmra.mrb[0].mxu0 %vm802_vm1, %v989_v39 }
 0x485   : > { %2542 = vmatpush3.bf16.xpose.msra.mxu0 %v1068_v40  ;;  %2545 = vmatprep.mubr.msk.bf16.mxu0 %vm870_vm2, %v1054_v41 }
 0x486   : > { %2648 = vmatprep.subr.msk.bf16.mxu0 %vm870_vm2, %v1060_v31 }
 0x487   : > { %v1368_v47 = vpop.permute.xlu1 %1367 }
 0x488   : > { %v1379_v48 = vsel %vm870_vm2, %v1368_v47, 0 }
 0x48b   : > { %v1364_v49 = vpop.permute.xlu1 %1363 }
 0x48d   : > { %2544 = vmatpush3.bf16.xpose.msra.mxu0 %v1071_v42 }
 0x48e   : > { %2651 = vmatprep.subr.msk.bf16.mxu0 %vm870_vm2, %v1366_v43  ;;  %v2405_v43 = vld [vmem:[%s3315_s0 + $0x40] sm:$0xff] }
 0x494   : > { %2546 = vmatmul.mubr.msk.bf16.vlgmr.msra.gmra.mrb[4].mxu0 %vm870_vm2, %v1056_v44 }
 0x495   : > { %2570 = vmatpush3.bf16.xpose.msra.mxu0 %v1376_v45  ;;  %2573 = vmatprep.mubr.msk.bf16.mxu0 %vm870_vm2, %v1362_v46 }
 0x496   : > { %2652 = vmatprep.subr.msk.bf16.mxu0 %vm870_vm2, %v1368_v47  ;;  %v2406_v47 = vld [vmem:[%s3315_s0 + $0x48] sm:$0xff] }
 0x49d   : > { %2572 = vmatpush3.bf16.xpose.msra.mxu0 %v1379_v48  ;;  %v2407_v48 = vld [vmem:[%s3315_s0 + $0x50] sm:$0xff] }
 0x4a4   : > { %2574 = vmatmul.mubr.msk.bf16.vlgmr.msra.gmra.mrb[8].mxu0 %vm870_vm2, %v1364_v49 }
 0x557   : > { %v3049_v50 = vpop.f32.mrb[0].mxu0 }
 0x558   : > { %v3051_v51 = vpop.f32.mrb[1].mxu0 }
 0x559   : > { %v3053_v52 = vpop.f32.mrb[2].mxu0 }
 0x55a   : > { %v1052_v53 = vpack.c.bf16 %v3053_v52, %v3049_v50  ;;  %v3057_v54 = vpop.f32.mrb[3].mxu0 }
 0x55b   : > { %v1051_v55 = vpack.c.bf16 %v3057_v54, %v3051_v51 }
 0x567   : > { %v2547_v56 = vpop.f32.mrb[4].mxu0 }
 0x568   : > { %v1107_v57 = vpop.f32.mrb[5].mxu0  ;;  %v1124_v59 = vmul.f32 0.35355338, %v2547_v56 }
 0x569   : > { %v1122_v60 = vmul.f32 0.35355338, %v1107_v57  ;;  %v2548_v61 = vpop.f32.mrb[6].mxu0 }
 0x56a   : > { %v1110_v62 = vpop.f32.mrb[7].mxu0  ;;  %v1125_v3 = vmul.f32 0.35355338, %v2548_v61  ;;  %v1133_v6 = vadd.f32 %v2395_v0, %v1124_v59  ;;  %v2408_v59 = vld [vmem:[%s3315_s0 + $0x58] sm:$0xff] }
 0x56b   : > { %v1123_v1 = vmul.f32 0.35355338, %v1110_v62  ;;  %v1131_v2 = vadd.f32 %v2393_v58, %v1122_v60 }
 0x56c   : > { %v1141_v9 = vsel %vm802_vm1, %v1133_v6, -inf  ;;  %v1134_v10 = vadd.f32 %v2396_v7, %v1125_v3 }
 0x56d   : > { %v1135_v4 = vsel %vm802_vm1, %v1131_v2, -inf  ;;  %v1132_v5 = vadd.f32 %v2394_v63, %v1123_v1 }
 0x56e   : > { %1136 = vmax.xlane.f32.xlu0 %v1135_v4  ;;  %v1144_v11 = vsel %vm802_vm1, %v1134_v10, -inf }
 0x56f   : > { %v1138_v8 = vsel %vm802_vm1, %v1132_v5, -inf }
 0x570   : > { %1139 = vmax.xlane.f32.xlu1 %v1138_v8 }
 0x572   : > { %1142 = vmax.xlane.f32.xlu0 %v1141_v9 }
 0x576   : > { %1145 = vmax.xlane.f32.xlu0 %v1144_v11 }
 0x577   : > { %v2575_v12 = vpop.f32.mrb[8].mxu0 }
 0x578   : > { %v1415_v13 = vpop.f32.mrb[9].mxu0  ;;  %v1432_v44 = vmul.f32 0.35355338, %v2575_v12 }
 0x579   : > { %v2576_v14 = vpop.f32.mrb[10].mxu0  ;;  %v1430_v42 = vmul.f32 0.35355338, %v1415_v13 }
 0x57a   : > { %v1418_v15 = vpop.f32.mrb[11].mxu0  ;;  %v1433_v49 = vmul.f32 0.35355338, %v2576_v14  ;;  %v1441_v58 = vadd.f32 %v2407_v48, %v1432_v44 }
 0x57b   : > { %v1431_v45 = vmul.f32 0.35355338, %v1418_v15  ;;  %v1439_v46 = vadd.f32 %v2405_v43, %v1430_v42 }
 0x57c   : > { %v1449_v61 = vsel %vm802_vm1, %v1441_v58, -inf  ;;  %v1442_v62 = vadd.f32 %v2408_v59, %v1433_v49 }
 0x57d   : > { %v1443_v56 = vsel %vm802_vm1, %v1439_v46, -inf  ;;  %v1440_v57 = vadd.f32 %v2406_v47, %v1431_v45 }
 0x57e   : > { %v1452_v63 = vsel %vm802_vm1, %v1442_v62, -inf }
 0x57f   : > { %v1446_v60 = vsel %vm802_vm1, %v1440_v57, -inf }
 0x5fb   : > { %v1137_v16 = vpop.xlane.xlu0 %1136 }
 0x5fc   : > { %v1147_v17 = vsub.f32 %v1131_v2, %v1137_v16 }
 0x5fd   : > { %v1140_v18 = vpop.xlane.xlu1 %1139 }
 0x5fe   : > { %v1151_v25 = vmul.f32 1.442695, %v1147_v17  ;;  %v1148_v26 = vsub.f32 %v1132_v5, %v1140_v18 }
 0x5ff   : > { %v1143_v22 = vpop.xlane.xlu0 %1142 }
 0x600   : > { %v1149_v24 = vsub.f32 %v1133_v6, %v1143_v22  ;;  %v1153_v30 = vmul.f32 1.442695, %v1148_v26 }
 0x602   : > { %v1155_v27 = vmul.f32 1.442695, %v1149_v24 }
 0x603   : > { %v1146_v28 = vpop.xlane.xlu0 %1145 }
 0x604   : > { %2702 = vpow2.f32 %v1155_v27  ;;  %v1150_v29 = vsub.f32 %v1134_v10, %v1146_v28 }
 0x605   : > { %2704 = vpow2.f32 %v1151_v25 }
 0x606   : > { %v1157_v31 = vmul.f32 1.442695, %v1150_v29 }
 0x608   : > { %2706 = vpow2.f32 %v1157_v31 }
 0x609   : > { %2708 = vpow2.f32 %v1153_v30 }
 0x60e   : > { %v3077_v32 = vpop.eup %2702 }
 0x60f   : > { %v1165_v33 = vsel %vm802_vm1, %v3077_v32, 0.0  ;;  %v3081_v36 = vpop.eup %2704 }
 0x610   : > { %1166 = vadd.xlane.f32.xlu1 %v1165_v33  ;;  %v1159_v39 = vsel %vm802_vm1, %v3081_v36, 0.0 }
 0x612   : > { %v3083_v37 = vpop.eup %2706 }
 0x613   : > { %v1168_v38 = vsel %vm802_vm1, %v3083_v37, 0.0  ;;  %v2709_v40 = vpop.eup %2708 }
 0x614   : > { %1169 = vadd.xlane.f32.xlu0 %v1168_v38  ;;  %1160 = vadd.xlane.f32.xlu1 %v1159_v39  ;;  %v1162_v41 = vsel %vm802_vm1, %v2709_v40, 0.0 }
 0x618   : > { %1163 = vadd.xlane.f32.xlu0 %v1162_v41 }
 0x625   : > { %1181 = vrot.lane.b32.xlu1 %v2989_v35, %s2780_s29 }
 0x629   : > { %1618 = vrot.lane.b32.xlu1 %v2989_v35, %s2781_s17 }
 0x62d   : > { %1620 = vrot.lane.b32.xlu1 %v2987_v34, %s2781_s17  ;;  %s3316_s17 = sld [smem:[#allocation4_spill]] }
 0x62e   : > { %1183 = vrot.lane.b32.xlu0 %v2987_v34, %s2780_s29 }
 0x631   : > { %1616 = vrot.lane.b32.xlu1 %v2987_v34, %s2782_s18 }
 0x632   : > { %1614 = vrot.lane.b32.xlu0 %v2989_v35, %s2782_s18  ;;  %s2783_s18 = smov 48  }
 0x633   : > { %v859_v48 = vld [vmem:[%s3316_s17 + $0x4] sm:$0xf] }
 0x634   : > { %v1252_v49 = vsel %vm1250_vm3, %v859_v48, 0 }
 0x651   : > { %1444 = vmax.xlane.f32.xlu0 %v1443_v56  ;;  %v858_v56 = vld [vmem:[%s3316_s17] sm:$0xf] }
 0x655   : > { %1447 = vmax.xlane.f32.xlu1 %v1446_v60  ;;  %1450 = vmax.xlane.f32.xlu0 %v1449_v61 }
 0x659   : > { %1453 = vmax.xlane.f32.xlu0 %v1452_v63 }
 0x69d   : > { %v1167_v0 = vpop.xlane.xlu1 %1166 }
 0x6a1   : > { %v1170_v1 = vpop.xlane.xlu0 %1169  ;;  %v1161_v2 = vpop.xlane.xlu1 %1160 }
 0x6a2   : > { %2710 = vrcp.f32 %v1170_v1 }
 0x6a3   : > { %2712 = vrcp.f32 %v1161_v2 }
 0x6a4   : > { %2714 = vrcp.f32 %v1167_v0 }
 0x6a5   : > { %v1164_v3 = vpop.xlane.xlu0 %1163  ;;  %v1182_v4 = vpop.permute.xlu1 %1181 }
 0x6a6   : > { %2716 = vrcp.f32 %v1164_v3  ;;  %2549 = vmatprep.subr.bf16.mxu1 %v1182_v4 }
 0x6a7   : > { %2550 = vmatpush3.bf16.msra.mxu1 %v1182_v4 }
 0x6a9   : > { %v1184_v5 = vpop.permute.xlu0 %1183  ;;  %v1619_v6 = vpop.permute.xlu1 %1618 }
 0x6aa   : > { %v1629_v7 = vsel %vm870_vm2, %v1619_v6, 0  ;;  %2551 = vmatprep.subr.bf16.mxu1 %v1184_v5  ;;  %2654 = vmatprep.subr.msk.bf16.mxu0 %vm870_vm2, %v1619_v6  ;;  %v2415_v6 = vld [vmem:[%s3315_s0 + $0x60] sm:$0xff] }
 0x6ab   : > { %2552 = vmatpush3.bf16.msra.mxu1 %v1184_v5  ;;  %2592 = vmatpush3.bf16.xpose.msra.mxu0 %v1629_v7  ;;  %v1310_v5 = vsel %vm1250_vm3, %v858_v56, 0 }
 0x6ac   : > { %v2711_v8 = vpop.eup %2710  ;;  %2649 = vmatprep.subr.msk.bf16.mxu1 %vm1250_vm3, %v859_v48 }
 0x6ad   : > { %v1615_v9 = vpop.permute.xlu0 %1614  ;;  %v1621_v10 = vpop.permute.xlu1 %1620  ;;  %v1178_v14 = vmul.f32 %v2711_v8, %v3083_v37 }
 0x6ae   : > { %v2713_v11 = vpop.eup %2712  ;;  %2655 = vmatprep.subr.msk.bf16.mxu0 %vm870_vm2, %v1621_v10  ;;  %2595 = vmatprep.mubr.msk.bf16.mxu0 %vm870_vm2, %v1615_v9  ;;  %v1632_v18 = vsel %vm870_vm2, %v1621_v10, 0 }
 0x6af   : > { %v2715_v12 = vpop.eup %2714  ;;  %v1175_v15 = vmul.f32 %v2713_v11, %v3081_v36  ;;  %v2416_v11 = vld [vmem:[%s3315_s0 + $0x68] sm:$0xff] }
 0x6b0   : > { %v2717_v13 = vpop.eup %2716  ;;  %v1177_v17 = vmul.f32 %v2715_v12, %v3077_v32  ;;  %v2417_v12 = vld [vmem:[%s3315_s0 + $0x70] sm:$0xff] }
 0x6b1   : > { %v1176_v16 = vmul.f32 %v2717_v13, %v2709_v40  ;;  %v1617_v25 = vpop.permute.xlu1 %1616 }
 0x6b2   : > { %v1180_v24 = vpack.c.bf16 %v1178_v14, %v1177_v17  ;;  %v2418_v17 = vld [vmem:[%s3315_s0 + $0x78] sm:$0xff] }
 0x6b3   : > { %2594 = vmatpush3.bf16.xpose.msra.mxu0 %v1632_v18  ;;  %v1179_v22 = vpack.c.bf16 %v1176_v16, %v1175_v15 }
 0x6b5   : > { %2553 = vmatprep.mubr.msk.bf16.mxu1 %vm802_vm1, %v1179_v22 }
 0x6b6   : > { %2554 = vmatmul.mubr.msk.bf16.vlgmr.msra.gmra.mrb[8].mxu1 %vm802_vm1, %v1180_v24 }
 0x6b7   : > { %2558 = vmatpush3.bf16.msra.mxu1 %v1252_v49 }
 0x6b8   : > { %2650 = vmatprep.subr.msk.bf16.mxu1 %vm1250_vm3, %v858_v56 }
 0x6ba   : > { %2596 = vmatmul.mubr.msk.bf16.vlgmr.msra.gmra.mrb[12].mxu0 %vm870_vm2, %v1617_v25 }
 0x6de   : > { %v1445_v26 = vpop.xlane.xlu0 %1444 }
 0x6df   : > { %v1455_v27 = vsub.f32 %v1439_v46, %v1445_v26 }
 0x6e1   : > { %v1459_v31 = vmul.f32 1.442695, %v1455_v27 }
 0x6e2   : > { %v1451_v28 = vpop.xlane.xlu0 %1450  ;;  %v1448_v29 = vpop.xlane.xlu1 %1447 }
 0x6e3   : > { %v1457_v30 = vsub.f32 %v1441_v58, %v1451_v28  ;;  %v1456_v32 = vsub.f32 %v1440_v57, %v1448_v29 }
 0x6e5   : > { %v1463_v33 = vmul.f32 1.442695, %v1457_v30  ;;  %v1461_v38 = vmul.f32 1.442695, %v1456_v32 }
 0x6e6   : > { %v1454_v36 = vpop.xlane.xlu0 %1453 }
 0x6e7   : > { %2718 = vpow2.f32 %v1463_v33  ;;  %v1458_v37 = vsub.f32 %v1442_v62, %v1454_v36 }
 0x6e8   : > { %2720 = vpow2.f32 %v1459_v31 }
 0x6e9   : > { %v1465_v39 = vmul.f32 1.442695, %v1458_v37 }
 0x6eb   : > { %2722 = vpow2.f32 %v1465_v39  ;;  %v860_v39 = vld [vmem:[%s3316_s17 + $0x8] sm:$0xf] }
 0x6ec   : > { %2724 = vpow2.f32 %v1461_v38  ;;  %v1559_v50 = vsel %vm1250_vm3, %v860_v39, 0 }
 0x6f1   : > { %v3123_v40 = vpop.eup %2718 }
 0x6f2   : > { %v1473_v41 = vsel %vm802_vm1, %v3123_v40, 0.0  ;;  %v3127_v42 = vpop.eup %2720 }
 0x6f3   : > { %1474 = vadd.xlane.f32.xlu1 %v1473_v41  ;;  %v1467_v44 = vsel %vm802_vm1, %v3127_v42, 0.0 }
 0x6f5   : > { %v3129_v43 = vpop.eup %2722 }
 0x6f6   : > { %v1476_v45 = vsel %vm802_vm1, %v3129_v43, 0.0  ;;  %v2725_v46 = vpop.eup %2724 }
 0x6f7   : > { %1468 = vadd.xlane.f32.xlu1 %v1467_v44  ;;  %1477 = vadd.xlane.f32.xlu0 %v1476_v45  ;;  %v1470_v47 = vsel %vm802_vm1, %v2725_v46, 0.0 }
 0x6fb   : > { %1471 = vadd.xlane.f32.xlu0 %v1470_v47 }
 0x708   : > { %1489 = vrot.lane.b32.xlu1 %v2989_v35, %s2783_s18 }
 0x711   : > { %1491 = vrot.lane.b32.xlu0 %v2987_v34, %s2783_s18  ;;  %s2784_s18 = smov 40  }
 0x780   : > { %v1475_v57 = vpop.xlane.xlu1 %1474 }
 0x784   : > { %v1478_v58 = vpop.xlane.xlu0 %1477  ;;  %v1469_v60 = vpop.xlane.xlu1 %1468 }
 0x788   : > { %v1472_v59 = vpop.xlane.xlu0 %1471  ;;  %v1490_v13 = vpop.permute.xlu1 %1489 }
 0x789   : > { %v2555_v61 = vpop.f32.mrb[8].mxu1  ;;  %2726 = vrcp.f32 %v1472_v59 }
 0x78a   : > { %v1227_v62 = vpop.f32.mrb[9].mxu1  ;;  %2728 = vrcp.f32 %v1469_v60 }
 0x78b   : > { %v2556_v63 = vpop.f32.mrb[10].mxu1  ;;  %2730 = vrcp.f32 %v1478_v58 }
 0x78c   : > { %v1243_v0 = vpack.c.bf16 %v2556_v63, %v2555_v61  ;;  %v1230_v1 = vpop.f32.mrb[11].mxu1  ;;  %2732 = vrcp.f32 %v1475_v57  ;;  %v1492_v32 = vpop.permute.xlu0 %1491 }
 0x78d   : > { %v1242_v2 = vpack.c.bf16 %v1230_v1, %v1227_v62  ;;  %v2597_v3 = vpop.f32.mrb[12].mxu0 }
 0x78e   : > { %v1668_v4 = vpop.f32.mrb[13].mxu0  ;;  %v1685_v7 = vmul.f32 0.35355338, %v2597_v3 }
 0x78f   : > { %v1683_v8 = vmul.f32 0.35355338, %v1668_v4  ;;  %2559 = vmatprep.mubr.msk.bf16.mxu1 %vm870_vm2, %v1242_v2  ;;  %v2598_v9 = vpop.f32.mrb[14].mxu0 }
 0x790   : > { %2560 = vmatmul.mubr.msk.bf16.vlgmr.msra.gmra.mrb[12].mxu1 %vm870_vm2, %v1243_v0  ;;  %v1671_v10 = vpop.f32.mrb[15].mxu0  ;;  %v1686_v14 = vmul.f32 0.35355338, %v2598_v9  ;;  %v1694_v24 = vadd.f32 %v2417_v12, %v1685_v7 }
 0x791   : > { %2564 = vmatpush3.bf16.msra.mxu1 %v1310_v5  ;;  %v1684_v15 = vmul.f32 0.35355338, %v1671_v10  ;;  %2565 = vmatprep.mubr.msk.bf16.mxu1 %vm870_vm2, %v1051_v55  ;;  %v1692_v16 = vadd.f32 %v2415_v6, %v1683_v8  ;;  %v861_v10 = vld [vmem:[%s3316_s17 + $0xc] sm:$0xf] }
 0x792   : > { %2577 = vmatprep.subr.bf16.mxu1 %v1490_v13  ;;  %v1695_v27 = vadd.f32 %v2418_v17, %v1686_v14  ;;  %v1702_v51 = vsel %vm802_vm1, %v1694_v24, -inf }
 0x793   : > { %v1696_v18 = vsel %vm802_vm1, %v1692_v16, -inf  ;;  %v1693_v22 = vadd.f32 %v2416_v11, %v1684_v15  ;;  %v2727_v25 = vpop.eup %2726 }
 0x794   : > { %1697 = vmax.xlane.f32.xlu1 %v1696_v18  ;;  %v2729_v28 = vpop.eup %2728  ;;  %v1484_v54 = vmul.f32 %v2727_v25, %v2725_v46  ;;  %v1705_v55 = vsel %vm802_vm1, %v1695_v27, -inf  ;;  %v1812_v25 = vsel %vm1250_vm3, %v861_v10, 0 }
 0x795   : > { %v1699_v26 = vsel %vm802_vm1, %v1693_v22, -inf  ;;  %v1483_v29 = vmul.f32 %v2729_v28, %v3127_v42  ;;  %v2731_v30 = vpop.eup %2730 }
 0x796   : > { %1700 = vmax.xlane.f32.xlu0 %v1699_v26  ;;  %v2733_v33 = vpop.eup %2732  ;;  %v1486_v36 = vmul.f32 %v2731_v30, %v3129_v43 }
 0x797   : > { %v1487_v31 = vpack.c.bf16 %v1484_v54, %v1483_v29  ;;  %v1485_v37 = vmul.f32 %v2733_v33, %v3123_v40  ;;  %v2423_v29 = vld [vmem:[%s3317_s20] ss:$0 sm:$0xff] }
 0x798   : > { %1703 = vmax.xlane.f32.xlu1 %v1702_v51 }
 0x799   : > { %v1488_v38 = vpack.c.bf16 %v1486_v36, %v1485_v37 }
 0x79a   : > { %1706 = vmax.xlane.f32.xlu0 %v1705_v55 }
 0x79c   : > { %2566 = vmatmul.mubr.msk.bf16.vlgmr.msra.gmra.mrb[12].mxu1 %vm870_vm2, %v1052_v53 }
 0x79d   : > { %2578 = vmatpush3.bf16.msra.mxu1 %v1490_v13  ;;  %2581 = vmatprep.mubr.msk.bf16.mxu1 %vm802_vm1, %v1487_v31 }
 0x79e   : > { %2579 = vmatprep.subr.bf16.mxu1 %v1492_v32 }
 0x7a1   : > { %2580 = vmatpush3.bf16.msra.mxu1 %v1492_v32 }
 0x7a2   : > { %2653 = vmatprep.subr.msk.bf16.mxu1 %vm1250_vm3, %v860_v39 }
 0x7a4   : > { %2582 = vmatmul.mubr.msk.bf16.vlgmr.msra.gmra.mrb[16].mxu1 %vm802_vm1, %v1488_v38 }
 0x7a5   : > { %2586 = vmatpush3.bf16.msra.mxu1 %v1559_v50 }
 0x821   : > { %v1698_v52 = vpop.xlane.xlu1 %1697 }
 0x822   : > { %v1708_v53 = vsub.f32 %v1692_v16, %v1698_v52 }
 0x823   : > { %v1701_v41 = vpop.xlane.xlu0 %1700 }
 0x824   : > { %v1709_v44 = vsub.f32 %v1693_v22, %v1701_v41  ;;  %v1712_v43 = vmul.f32 1.442695, %v1708_v53 }
 0x825   : > { %v1704_v42 = vpop.xlane.xlu1 %1703 }
 0x826   : > { %v1710_v45 = vsub.f32 %v1694_v24, %v1704_v42  ;;  %v1714_v48 = vmul.f32 1.442695, %v1709_v44 }
 0x827   : > { %v1707_v46 = vpop.xlane.xlu0 %1706 }
 0x828   : > { %v1716_v47 = vmul.f32 1.442695, %v1710_v45  ;;  %v1711_v40 = vsub.f32 %v1695_v27, %v1707_v46 }
 0x82a   : > { %2734 = vpow2.f32 %v1716_v47  ;;  %v1718_v49 = vmul.f32 1.442695, %v1711_v40 }
 0x82b   : > { %2736 = vpow2.f32 %v1712_v43 }
 0x82c   : > { %2738 = vpow2.f32 %v1718_v49 }
 0x82d   : > { %2740 = vpow2.f32 %v1714_v48 }
 0x834   : > { %v2735_v56 = vpop.eup %2734 }
 0x835   : > { %v2737_v57 = vpop.eup %2736  ;;  %v1726_v58 = vsel %vm802_vm1, %v2735_v56, 0.0 }
 0x836   : > { %v2739_v59 = vpop.eup %2738  ;;  %1727 = vadd.xlane.f32.xlu1 %v1726_v58  ;;  %v1720_v62 = vsel %vm802_vm1, %v2737_v57, 0.0 }
 0x837   : > { %v1729_v60 = vsel %vm802_vm1, %v2739_v59, 0.0  ;;  %v2741_v61 = vpop.eup %2740 }
 0x838   : > { %1730 = vadd.xlane.f32.xlu0 %v1729_v60  ;;  %v1723_v63 = vsel %vm802_vm1, %v2741_v61, 0.0 }
 0x83a   : > { %1721 = vadd.xlane.f32.xlu1 %v1720_v62 }
 0x83c   : > { %1724 = vadd.xlane.f32.xlu0 %v1723_v63 }
 0x84b   : > { %1742 = vrot.lane.b32.xlu1 %v2989_v35, %s2784_s18 }
 0x852   : > { %1744 = vrot.lane.b32.xlu0 %v2987_v34, %s2784_s18 }
 0x877   : > { %v2583_v0 = vpop.f32.mrb[16].mxu1 }
 0x878   : > { %v1535_v1 = vpop.f32.mrb[17].mxu1 }
 0x879   : > { %v2584_v2 = vpop.f32.mrb[18].mxu1 }
 0x87a   : > { %v1551_v3 = vpack.c.bf16 %v2584_v2, %v2583_v0  ;;  %v1538_v4 = vpop.f32.mrb[19].mxu1 }
 0x87b   : > { %v1550_v5 = vpack.c.bf16 %v1538_v4, %v1535_v1  ;;  %v2681_v4 = vld [vmem:[%s2914_s4 + $0x8] sm:$0xff]  }
 0x87d   : > { %2587 = vmatprep.mubr.msk.bf16.mxu1 %vm870_vm2, %v1550_v5  ;;  %v2682_v5 = vld [vmem:[%s2924_s21] sm:$0xff]  }
 0x87e   : > { %2588 = vmatmul.mubr.msk.bf16.vlgmr.msra.gmra.mrb[12].mxu1 %vm870_vm2, %v1551_v3  ;;  %v2680_v3 = vld [vmem:[%s2914_s4] sm:$0xff]  }
 0x87f   : > { %2613 = vmatprep.subr.bf16.mxu0 %v2680_v3 }
 0x880   : > { %2614 = vmatpush3.bf16.msra.mxu0 %v2680_v3 }
 0x881   : > { %2615 = vmatprep.subr.bf16.mxu0 %v2681_v4 }
 0x884   : > { %2616 = vmatpush3.bf16.msra.mxu0 %v2681_v4 }
 0x885   : > { %2621 = vmatprep.subr.bf16.mxu0 %v2682_v5 }
 0x8c3   : > { %v1728_v6 = vpop.xlane.xlu1 %1727 }
 0x8c5   : > { %v1731_v7 = vpop.xlane.xlu0 %1730 }
 0x8c6   : > { %2742 = vrcp.f32 %v1731_v7 }
 0x8c7   : > { %v1722_v8 = vpop.xlane.xlu1 %1721 }
 0x8c8   : > { %2744 = vrcp.f32 %v1722_v8 }
 0x8c9   : > { %2746 = vrcp.f32 %v1728_v6  ;;  %v1725_v35 = vpop.xlane.xlu0 %1724 }
 0x8ca   : > { %2748 = vrcp.f32 %v1725_v35 }
 0x8cb   : > { %v1743_v34 = vpop.permute.xlu1 %1742 }
 0x8cc   : > { %2599 = vmatprep.subr.bf16.mxu1 %v1743_v34 }
 0x8cd   : > { %v1745_v9 = vpop.permute.xlu0 %1744  ;;  %2600 = vmatpush3.bf16.msra.mxu1 %v1743_v34 }
 0x8ce   : > { %2601 = vmatprep.subr.bf16.mxu1 %v1745_v9 }
 0x8d0   : > { %v2743_v11 = vpop.eup %2742 }
 0x8d1   : > { %2602 = vmatpush3.bf16.msra.mxu1 %v1745_v9  ;;  %v1739_v15 = vmul.f32 %v2743_v11, %v2739_v59 }
 0x8d2   : > { %v2745_v12 = vpop.eup %2744  ;;  %2656 = vmatprep.subr.msk.bf16.mxu1 %vm1250_vm3, %v861_v10 }
 0x8d3   : > { %v2747_v13 = vpop.eup %2746  ;;  %v1736_v16 = vmul.f32 %v2745_v12, %v2737_v57 }
 0x8d4   : > { %v2749_v14 = vpop.eup %2748  ;;  %v1738_v18 = vmul.f32 %v2747_v13, %v2735_v56 }
 0x8d5   : > { %v1737_v17 = vmul.f32 %v2749_v14, %v2741_v61 }
 0x8d6   : > { %v1741_v24 = vpack.c.bf16 %v1739_v15, %v1738_v18 }
 0x8d7   : > { %v1740_v22 = vpack.c.bf16 %v1737_v17, %v1736_v16  ;;  %v2424_v17 = vld [vmem:[%s3318_s1] ss:$0 sm:$0xff] }
 0x8d9   : > { %2603 = vmatprep.mubr.msk.bf16.mxu1 %vm802_vm1, %v1740_v22 }
 0x8da   : > { %2604 = vmatmul.mubr.msk.bf16.vlgmr.msra.gmra.mrb[20].mxu1 %vm802_vm1, %v1741_v24 }
 0x8db   : > { %2608 = vmatpush3.bf16.msra.mxu1 %v1812_v25 }
 0x9ad   : > { %v2605_v26 = vpop.f32.mrb[20].mxu1 }
 0x9ae   : > { %v1788_v27 = vpop.f32.mrb[21].mxu1 }
 0x9af   : > { %v2606_v28 = vpop.f32.mrb[22].mxu1 }
 0x9b0   : > { %v1804_v51 = vpack.c.bf16 %v2606_v28, %v2605_v26  ;;  %v1791_v54 = vpop.f32.mrb[23].mxu1 }
 0x9b1   : > { %v1803_v55 = vpack.c.bf16 %v1791_v54, %v1788_v27  ;;  %v2425_v27 = vld [vmem:[%s3319_s24] ss:$0 sm:$0xff] }
 0x9b3   : > { %2609 = vmatprep.mubr.msk.bf16.mxu1 %vm870_vm2, %v1803_v55 }
 0x9b4   : > { %2610 = vmatmul.mubr.msk.bf16.vlgmr.msra.gmra.mrb[12].mxu1 %vm870_vm2, %v1804_v51 }
 0xa87   : > { %v2611_v30 = vpop.f32.mrb[12].mxu1 }
 0xa88   : > { %v1848_v31 = vpop.f32.mrb[13].mxu1  ;;  %v1876_v33 = vadd.f32 %v2611_v30, %v2423_v29 }
 0xa89   : > { %v1874_v32 = vadd.f32 %v2423_v29, %v1848_v31  ;;  %v2612_v36 = vpop.f32.mrb[14].mxu1 }
 0xa8a   : > { %v1851_v37 = vpop.f32.mrb[15].mxu1  ;;  %v1877_v38 = vadd.f32 %v2612_v36, %v2423_v29  ;;  %v1880_v41 = vadd.f32 %v1876_v33, %v2972_v21 }
 0xa8b   : > { %v1875_v39 = vadd.f32 %v2423_v29, %v1851_v37  ;;  %v1878_v50 = vadd.f32 %v1874_v32, %v2968_v19 }
 0xa8c   : > { %v1881_v44 = vadd.f32 %v1877_v38, %v2976_v23  ;;  %v1890_v45 = vsel %vm802_vm1, %v1880_v41, 0.0 }
 0xa8d   : > { %v1884_v52 = vsel %vm802_vm1, %v1878_v50, 0.0  ;;  %v1879_v53 = vadd.f32 %v1875_v39, %v2970_v20  ;;  %v2683_v39 = vld [vmem:[%s2924_s21 + $0x8] sm:$0xff]  }
 0xa8e   : > { %1885 = vadd.xlane.f32.xlu1 %v1884_v52  ;;  %v1893_v43 = vsel %vm802_vm1, %v1881_v44, 0.0  ;;  %v2685_v52 = vld [vmem:[%s2924_s21 + $0x18] sm:$0xff]  }
 0xa8f   : > { %v1887_v42 = vsel %vm802_vm1, %v1879_v53, 0.0 }
 0xa90   : > { %1888 = vadd.xlane.f32.xlu0 %v1887_v42 }
 0xa92   : > { %1891 = vadd.xlane.f32.xlu1 %v1890_v45 }
 0xa94   : > { %1894 = vadd.xlane.f32.xlu0 %v1893_v43 }
 0xb1b   : > { %v1886_v46 = vpop.xlane.xlu1 %1885 }
 0xb1c   : > { %v1897_v19 = vmul.f32 0.03125, %v1886_v46 }
 0xb1d   : > { %v1889_v47 = vpop.xlane.xlu0 %1888 }
 0xb1e   : > { %v1901_v40 = vsub.f32 %v1878_v50, %v1897_v19  ;;  %v1898_v48 = vmul.f32 0.03125, %v1889_v47  ;;  %v2684_v50 = vld [vmem:[%s2924_s21 + $0x10] sm:$0xff]  }
 0xb1f   : > { %v1892_v20 = vpop.xlane.xlu1 %1891 }
 0xb20   : > { %v1902_v49 = vsub.f32 %v1879_v53, %v1898_v48  ;;  %v1899_v21 = vmul.f32 0.03125, %v1892_v20  ;;  %v1905_v56 = vmul.f32 %v1901_v40, %v1901_v40  ;;  %v2426_v53 = vld [vmem:[%s664_s6] ss:$0 sm:$0xff] }
 0xb21   : > { %v1895_v57 = vpop.xlane.xlu0 %1894 }
 0xb22   : > { %v1903_v58 = vsub.f32 %v1880_v41, %v1899_v21  ;;  %v1900_v23 = vmul.f32 0.03125, %v1895_v57  ;;  %v1909_v59 = vsel %vm802_vm1, %v1905_v56, 0.0  ;;  %v1906_v60 = vmul.f32 %v1902_v49, %v1902_v49  ;;  %v2431_v57 = vld [vmem:[%s672_s25] ss:$0 sm:$0xff] }
 0xb23   : > { %1910 = vadd.xlane.f32.xlu1 %v1909_v59 }
 0xb24   : > { %v1904_v61 = vsub.f32 %v1881_v44, %v1900_v23  ;;  %v1912_v62 = vsel %vm802_vm1, %v1906_v60, 0.0  ;;  %v1907_v63 = vmul.f32 %v1903_v58, %v1903_v58 }
 0xb25   : > { %1913 = vadd.xlane.f32.xlu0 %v1912_v62 }
 0xb26   : > { %v1915_v0 = vsel %vm802_vm1, %v1907_v63, 0.0  ;;  %v1908_v1 = vmul.f32 %v1904_v61, %v1904_v61 }
 0xb27   : > { %1916 = vadd.xlane.f32.xlu1 %v1915_v0 }
 0xb28   : > { %v1918_v2 = vsel %vm802_vm1, %v1908_v1, 0.0 }
 0xb29   : > { %1919 = vadd.xlane.f32.xlu0 %v1918_v2 }
 0xbb0   : > { %v1911_v6 = vpop.xlane.xlu1 %1910 }
 0xbb1   : > { %v1921_v7 = vmul.f32 0.03125, %v1911_v6 }
 0xbb2   : > { %v1914_v8 = vpop.xlane.xlu0 %1913 }
 0xbb3   : > { %v1925_v35 = vadd.f32 1e-05, %v1921_v7  ;;  %v1922_v34 = vmul.f32 0.03125, %v1914_v8 }
 0xbb4   : > { %v1917_v9 = vpop.xlane.xlu1 %1916 }
 0xbb5   : > { %2750 = vrsqrt.f32 %v1925_v35  ;;  %v1926_v10 = vadd.f32 1e-05, %v1922_v34  ;;  %v1923_v11 = vmul.f32 0.03125, %v1917_v9 }
 0xbb6   : > { %v1920_v12 = vpop.xlane.xlu0 %1919 }
 0xbb7   : > { %2752 = vrsqrt.f32 %v1926_v10  ;;  %v1927_v13 = vadd.f32 1e-05, %v1923_v11  ;;  %v1924_v14 = vmul.f32 0.03125, %v1920_v12 }
 0xbb9   : > { %2754 = vrsqrt.f32 %v1927_v13  ;;  %v1928_v15 = vadd.f32 1e-05, %v1924_v14 }
 0xbbb   : > { %2756 = vrsqrt.f32 %v1928_v15 }
 0xbbf   : > { %v2751_v16 = vpop.eup %2750 }
 0xbc0   : > { %v1933_v18 = vmul.f32 %v2751_v16, %v1901_v40 }
 0xbc1   : > { %v2753_v22 = vpop.eup %2752 }
 0xbc2   : > { %v1934_v24 = vmul.f32 %v2753_v22, %v1902_v49  ;;  %v1943_v25 = vmul.f32 %v2424_v17, %v1933_v18 }
 0xbc3   : > { %v2755_v26 = vpop.eup %2754 }
 0xbc4   : > { %v1935_v28 = vmul.f32 %v2755_v26, %v1903_v58  ;;  %v1944_v51 = vmul.f32 %v2424_v17, %v1934_v24  ;;  %v1953_v30 = vadd.f32 %v2425_v27, %v1943_v25 }
 0xbc5   : > { %v2757_v54 = vpop.eup %2756 }
 0xbc6   : > { %v1945_v55 = vmul.f32 %v2424_v17, %v1935_v28  ;;  %v1936_v29 = vmul.f32 %v2757_v54, %v1904_v61  ;;  %v1954_v31 = vadd.f32 %v2425_v27, %v1944_v51 }
 0xbc8   : > { %v1946_v33 = vmul.f32 %v2424_v17, %v1936_v29  ;;  %v1962_v32 = vpack.c.bf16 %v1954_v31, %v1953_v30  ;;  %v1955_v36 = vadd.f32 %v2425_v27, %v1945_v55 }
 0xbca   : > { %2617 = vmatprep.mubr.msk.bf16.mxu0 %vm802_vm1, %v1962_v32  ;;  %v1956_v37 = vadd.f32 %v2425_v27, %v1946_v33 }
 0xbcc   : > { %v1963_v38 = vpack.c.bf16 %v1956_v37, %v1955_v36 }
 0xbce   : > { %2618 = vmatmul.mubr.msk.bf16.vlgmr.msra.gmra.mrb[16].mxu0 %vm802_vm1, %v1963_v38 }
 0xbcf   : > { %2622 = vmatpush3.bf16.msra.mxu0 %v2682_v5 }
 0xbd0   : > { %2623 = vmatprep.subr.bf16.mxu0 %v2683_v39 }
 0xbd3   : > { %2624 = vmatpush3.bf16.msra.mxu0 %v2683_v39 }
 0xbd4   : > { %2625 = vmatprep.subr.bf16.mxu0 %v2684_v50 }
 0xbd7   : > { %2626 = vmatpush3.bf16.msra.mxu0 %v2684_v50 }
 0xbd8   : > { %2627 = vmatprep.subr.bf16.mxu0 %v2685_v52 }
 0xbdb   : > { %2628 = vmatpush3.bf16.msra.mxu0 %v2685_v52 }
 0xca1   : > { %v2619_v41 = vpop.f32.mrb[16].mxu0 }
 0xca2   : > { %v2031_v42 = vadd.f32 %v2619_v41, %v2426_v53  ;;  %v2022_v44 = vpop.f32.mrb[17].mxu0  ;;  %v2438_v41 = vld [vmem:[%s675_s28] ss:$0 sm:$0xff]  ;;  %s3320_s28 = sld [smem:[#allocation10_spill]] (!%p2440_p5) }
 0xca3   : > { %v2023_v45 = vadd.f32 %v2426_v53, %v2022_v44  ;;  %v2620_v43 = vpop.f32.mrb[18].mxu0 }
 0xca4   : > { %v2034_v46 = vadd.f32 %v2620_v43, %v2426_v53  ;;  %v2025_v19 = vpop.f32.mrb[19].mxu0  ;;  %v2039_v40 = vmax.f32 %v2031_v42, 0.0 }
 0xca5   : > { %v2026_v47 = vadd.f32 %v2426_v53, %v2025_v19  ;;  %v2037_v20 = vmax.f32 %v2023_v45, 0.0  ;;  %v2439_v45 = vld [vmem:[%s678_s3] ss:$0 sm:$0xff] }
 0xca6   : > { %v2040_v48 = vmax.f32 %v2034_v46, 0.0 }
 0xca7   : > { %v2038_v49 = vmax.f32 %v2026_v47, 0.0 }
 0xca8   : > { %v2051_v21 = vpack.c.bf16 %v2040_v48, %v2039_v40 }
 0xca9   : > { %v2050_v56 = vpack.c.bf16 %v2038_v49, %v2037_v20 }
 0xcab   : > { %2629 = vmatprep.mubr.msk.bf16.mxu0 %vm2082_vm4, %v2050_v56 }
 0xcac   : > { %2630 = vmatmul.mubr.msk.bf16.vlgmr.msra.gmra.mrb[20].mxu0 %vm2082_vm4, %v2051_v21 }
 0xd7f   : > { %v2631_v58 = vpop.f32.mrb[20].mxu0 }
 0xd80   : > { %v2123_v23 = vpop.f32.mrb[21].mxu0  ;;  %v2132_v59 = vadd.f32 %v2631_v58, %v2431_v57 }
 0xd81   : > { %v2124_v60 = vadd.f32 %v2431_v57, %v2123_v23  ;;  %v2632_v61 = vpop.f32.mrb[22].mxu0 }
 0xd82   : > { %v2126_v62 = vpop.f32.mrb[23].mxu0  ;;  %v2135_v63 = vadd.f32 %v2632_v61, %v2431_v57  ;;  %v2140_v4 = vadd.f32 %v2132_v59, %v1955_v36 }
 0xd83   : > { %v2127_v0 = vadd.f32 %v2431_v57, %v2126_v62  ;;  %v2138_v1 = vadd.f32 %v2124_v60, %v1953_v30 }
 0xd84   : > { %v2141_v6 = vadd.f32 %v2135_v63, %v1956_v37  ;;  %v2150_v7 = vsel %vm802_vm1, %v2140_v4, 0.0 }
 0xd85   : > { %v2144_v2 = vsel %vm802_vm1, %v2138_v1, 0.0  ;;  %v2139_v3 = vadd.f32 %v2127_v0, %v1954_v31 }
 0xd86   : > { %2145 = vadd.xlane.f32.xlu1 %v2144_v2  ;;  %v2153_v8 = vsel %vm802_vm1, %v2141_v6, 0.0 }
 0xd87   : > { %v2147_v5 = vsel %vm802_vm1, %v2139_v3, 0.0 }
 0xd88   : > { %2148 = vadd.xlane.f32.xlu0 %v2147_v5 }
 0xd8a   : > { %2151 = vadd.xlane.f32.xlu1 %v2150_v7 }
 0xd8c   : > { %2154 = vadd.xlane.f32.xlu0 %v2153_v8 }
 0xe13   : > { %v2146_v35 = vpop.xlane.xlu1 %2145 }
 0xe14   : > { %v2156_v34 = vmul.f32 0.03125, %v2146_v35 }
 0xe15   : > { %v2149_v9 = vpop.xlane.xlu0 %2148 }
 0xe16   : > { %v2160_v10 = vsub.f32 %v2138_v1, %v2156_v34  ;;  %v2157_v11 = vmul.f32 0.03125, %v2149_v9 }
 0xe17   : > { %v2152_v12 = vpop.xlane.xlu1 %2151 }
 0xe18   : > { %v2161_v13 = vsub.f32 %v2139_v3, %v2157_v11  ;;  %v2158_v14 = vmul.f32 0.03125, %v2152_v12  ;;  %v2164_v15 = vmul.f32 %v2160_v10, %v2160_v10 }
 0xe19   : > { %v2155_v16 = vpop.xlane.xlu0 %2154 }
 0xe1a   : > { %v2162_v17 = vsub.f32 %v2140_v4, %v2158_v14  ;;  %v2159_v18 = vmul.f32 0.03125, %v2155_v16  ;;  %v2168_v22 = vsel %vm802_vm1, %v2164_v15, 0.0  ;;  %v2165_v24 = vmul.f32 %v2161_v13, %v2161_v13 }
 0xe1b   : > { %2169 = vadd.xlane.f32.xlu1 %v2168_v22 }
 0xe1c   : > { %v2163_v25 = vsub.f32 %v2141_v6, %v2159_v18  ;;  %v2171_v26 = vsel %vm802_vm1, %v2165_v24, 0.0  ;;  %v2166_v27 = vmul.f32 %v2162_v17, %v2162_v17 }
 0xe1d   : > { %2172 = vadd.xlane.f32.xlu0 %v2171_v26 }
 0xe1e   : > { %v2174_v28 = vsel %vm802_vm1, %v2166_v27, 0.0  ;;  %v2167_v51 = vmul.f32 %v2163_v25, %v2163_v25 }
 0xe1f   : > { %2175 = vadd.xlane.f32.xlu1 %v2174_v28 }
 0xe20   : > { %v2177_v54 = vsel %vm802_vm1, %v2167_v51, 0.0 }
 0xe21   : > { %2178 = vadd.xlane.f32.xlu0 %v2177_v54 }
 0xea8   : > { %v2170_v55 = vpop.xlane.xlu1 %2169 }
 0xea9   : > { %v2180_v29 = vmul.f32 0.03125, %v2170_v55 }
 0xeaa   : > { %v2173_v30 = vpop.xlane.xlu0 %2172 }
 0xeab   : > { %v2184_v31 = vadd.f32 1e-05, %v2180_v29  ;;  %v2181_v33 = vmul.f32 0.03125, %v2173_v30 }
 0xeac   : > { %v2176_v32 = vpop.xlane.xlu1 %2175 }
 0xead   : > { %2758 = vrsqrt.f32 %v2184_v31  ;;  %v2185_v36 = vadd.f32 1e-05, %v2181_v33  ;;  %v2182_v37 = vmul.f32 0.03125, %v2176_v32 }
 0xeae   : > { %v2179_v38 = vpop.xlane.xlu0 %2178 }
 0xeaf   : > { %2760 = vrsqrt.f32 %v2185_v36  ;;  %v2186_v39 = vadd.f32 1e-05, %v2182_v37  ;;  %v2183_v50 = vmul.f32 0.03125, %v2179_v38 }
 0xeb1   : > { %2762 = vrsqrt.f32 %v2186_v39  ;;  %v2187_v52 = vadd.f32 1e-05, %v2183_v50 }
 0xeb3   : > { %2764 = vrsqrt.f32 %v2187_v52 }
 0xeb7   : > { %v2759_v53 = vpop.eup %2758 }
 0xeb8   : > { %v2192_v42 = vmul.f32 %v2759_v53, %v2160_v10 }
 0xeb9   : > { %v2761_v44 = vpop.eup %2760 }
 0xeba   : > { %v2202_v43 = vmul.f32 %v2438_v41, %v2192_v42  ;;  %v2193_v46 = vmul.f32 %v2761_v44, %v2161_v13 }
 0xebb   : > { %v2763_v19 = vpop.eup %2762 }
 0xebc   : > { %v2212_v47 = vadd.f32 %v2439_v45, %v2202_v43  ;;  %v2203_v40 = vmul.f32 %v2438_v41, %v2193_v46  ;;  %v2194_v48 = vmul.f32 %v2763_v19, %v2162_v17 }
 0xebd   : > { %v2765_v20 = vpop.eup %2764 }
 0xebe   : > { %2216 = vst.msk [vmem:[#allocation2] sm:$0xff] %vm802_vm1, %v2212_v47  ;;  %v2213_v49 = vadd.f32 %v2439_v45, %v2203_v40  ;;  %v2204_v21 = vmul.f32 %v2438_v41, %v2194_v48  ;;  %v2195_v56 = vmul.f32 %v2765_v20, %v2163_v25  ;;  %2223 = sbr.rel (%p2440_p5) target bundleno = 3781 (0xec5), region = 92  ;;  %2224 = vst.msk [vmem:[%s3320_s28] sm:$0xff] (!%p2440_p5), %vm802_vm1, %v2212_v47 }
 0xec0   : > { %2217 = vst.msk [vmem:[#allocation2 + $0x8] sm:$0xff] %vm802_vm1, %v2213_v49  ;;  %v2214_v57 = vadd.f32 %v2439_v45, %v2204_v21  ;;  %v2205_v58 = vmul.f32 %v2438_v41, %v2195_v56  ;;  %2225 = vst.msk [vmem:[%s3320_s28 + $0x8] sm:$0xff] (!%p2440_p5), %vm802_vm1, %v2213_v49 }
 0xec2   : > { %2218 = vst.msk [vmem:[#allocation2 + $0x10] sm:$0xff] %vm802_vm1, %v2214_v57  ;;  %v2215_v23 = vadd.f32 %v2439_v45, %v2205_v58  ;;  %2226 = vst.msk [vmem:[%s3320_s28 + $0x10] sm:$0xff] (!%p2440_p5), %vm802_vm1, %v2214_v57 }
 0xec4   : > { %2219 = vst.msk [vmem:[#allocation2 + $0x18] sm:$0xff] %vm802_vm1, %v2215_v23  ;;  %2227 = vst.msk [vmem:[%s3320_s28 + $0x18] sm:$0xff] (!%p2440_p5), %vm802_vm1, %v2215_v23 }
 0xec5 PF: > { %s3321_s22 = sld [smem:[#allocation3_spill]] }
 0xecb   : > { %s26_s21 = sadd.s32 1, %s3321_s22  }
 0xecc   : > { %p23_p6 = scmp.ge.s32.totalorder %s26_s21, 4  }
 0xece   :  { %25 = sbr.rel (!%p23_p6) target bundleno = 7 (0x7), region = 154 }

</bundles_post_ra>
